<compile_context>
chip_gen: v6e
topology: v6e:2x2x1
jax: 0.10.0
libtpu: 0.0.40
codegen_flags: <defaults>
</compile_context>

<pallas_src>
import functools

import jax
import jax.numpy as jnp
from jax.experimental import pallas as pl
from jax.experimental.pallas import tpu as pltpu

IN_FEATURES = 3 * 32 * 32   # 3072
OUT_FEATURES = 10
BN_EPS = 1e-5


def _round_up(x, m):
    return ((x + m - 1) // m) * m


def _pick_tile_and_vmem_limit():
    """Batch-tile rows + scoped-VMEM limit per TPU generation."""
    vmem_bytes = 64 << 20
    try:
        vmem_bytes = getattr(pltpu.get_tpu_info(), "vmem_capacity_bytes", vmem_bytes)
    except Exception:
        pass
    if vmem_bytes > (64 << 20):      # v5e / v6e: 128 MiB physical VMEM
        return 2048, 96 << 20
    return 1024, 48 << 20            # v7x: 64 MiB per TensorCore


def bnlnn1_kernel(x_ref, w_ref, gamma_ref, beta_ref, o_ref, sum_ref, sq_ref,
                  *, batch, tile):
    # x_ref:     (tile, 3072)   current batch tile (streamed, double-buffered)
    # w_ref:     (3072, 10)     linear weight (pre-transposed), resident
    # gamma_ref: (1, 10)        BN scale, resident
    # beta_ref:  (1, 10)        BN shift, resident
    # o_ref:     (B_pad, 10)    resident logits block / final output
    # sum_ref:   (1, 10)        VMEM scratch: running sum of logits
    # sq_ref:    (1, 10)        VMEM scratch: running sum of logits^2
    i = pl.program_id(0)
    n = pl.num_programs(0)

    @pl.when(i == 0)
    def _init():
        sum_ref[...] = jnp.zeros_like(sum_ref)
        sq_ref[...] = jnp.zeros_like(sq_ref)

    # Linear (no bias): MXU matmul on this tile of rows.
    logits = jnp.dot(x_ref[...], w_ref[...], preferred_element_type=jnp.float32)

    # Accumulate batch statistics (mask zero-padded tail rows only if padding exists).
    if batch % tile != 0:
        row_ids = i * tile + jax.lax.broadcasted_iota(jnp.int32, (tile, 1), 0)
        stat_rows = jnp.where(row_ids < batch, logits, 0.0)
    else:
        stat_rows = logits
    sum_ref[...] += jnp.sum(stat_rows, axis=0, keepdims=True)
    sq_ref[...] += jnp.sum(stat_rows * stat_rows, axis=0, keepdims=True)

    # Stash this tile's logits into the resident output block.
    row0 = pl.multiple_of(i * tile, 8)
    o_ref[pl.ds(row0, tile), :] = logits

    # Finalize BatchNorm once, on the last grid step, over the resident logits.
    @pl.when(i == n - 1)
    def _finalize():
        inv_n = jnp.float32(1.0 / batch)
        mean = sum_ref[...] * inv_n
        var = sq_ref[...] * inv_n - mean * mean          # biased variance
        inv_std = jax.lax.rsqrt(var + BN_EPS)
        scale = gamma_ref[...] * inv_std                 # (1, 10)
        shift = beta_ref[...] - mean * scale             # (1, 10)
        o_ref[...] = o_ref[...] * scale + shift


def bnlnn1_forward(x, w_t, gamma, beta):
    """x: (B, 3, 32, 32) float32 NCHW. Returns (B, 10) float32."""
    B = x.shape[0]
    x_flat = x.reshape(B, IN_FEATURES)                   # nn.Flatten()

    tile, vmem_limit = _pick_tile_and_vmem_limit()
    tile = min(tile, _round_up(B, 8))                    # don't over-tile tiny batches
    b_pad = _round_up(B, tile)
    if b_pad != B:
        x_flat = jnp.pad(x_flat, ((0, b_pad - B), (0, 0)))

    gamma2d = gamma.reshape(1, OUT_FEATURES)
    beta2d = beta.reshape(1, OUT_FEATURES)
    n_steps = b_pad // tile

    kernel = functools.partial(bnlnn1_kernel, batch=B, tile=tile)

    out = pl.pallas_call(
        kernel,
        out_shape=jax.ShapeDtypeStruct((b_pad, OUT_FEATURES), jnp.float32),
        grid_spec=pltpu.PrefetchScalarGridSpec(
            num_scalar_prefetch=0,
            grid=(n_steps,),
            in_specs=[
                pl.BlockSpec((tile, IN_FEATURES), lambda i: (i, 0)),          # streamed x
                pl.BlockSpec((IN_FEATURES, OUT_FEATURES), lambda i: (0, 0)),  # resident W^T
                pl.BlockSpec((1, OUT_FEATURES), lambda i: (0, 0)),            # resident gamma
                pl.BlockSpec((1, OUT_FEATURES), lambda i: (0, 0)),            # resident beta
            ],
            out_specs=pl.BlockSpec((b_pad, OUT_FEATURES), lambda i: (0, 0)),  # resident logits
            scratch_shapes=[
                pltpu.VMEM((1, OUT_FEATURES), jnp.float32),   # sum
                pltpu.VMEM((1, OUT_FEATURES), jnp.float32),   # sum of squares
            ],
        ),
        compiler_params=pltpu.CompilerParams(
            dimension_semantics=("arbitrary",),   # output block reused across the batch axis
            vmem_limit_bytes=vmem_limit,
        ),
    )(x_flat, w_t, gamma2d, beta2d)

    return out[:B] if b_pad != B else out


def init_params(key):
    """Deterministic parameter init matching PyTorch shapes.

    nn.Linear(3072, 10, bias=False): weight (10, 3072).
    nn.BatchNorm1d(10): gamma ones, beta zeros.
    """
    bound = 1.0 / jnp.sqrt(jnp.float32(IN_FEATURES))
    w = jax.random.uniform(key, (OUT_FEATURES, IN_FEATURES),
                           dtype=jnp.float32, minval=-bound, maxval=bound)
    w_t = jnp.transpose(w)                                # (3072, 10) for direct matmul
    gamma = jnp.ones((OUT_FEATURES,), jnp.float32)
    beta = jnp.zeros((OUT_FEATURES,), jnp.float32)
    return w_t, gamma, beta


def reference_forward(x, w_t, gamma, beta):
    """Pure-JAX reference (training-mode BatchNorm1d, biased variance)."""
    B = x.shape[0]
    logits = x.reshape(B, IN_FEATURES) @ w_t
    mean = logits.mean(axis=0, keepdims=True)
    var = ((logits - mean) ** 2).mean(axis=0, keepdims=True)
    return (logits - mean) / jnp.sqrt(var + BN_EPS) * gamma[None, :] + beta[None, :]


if __name__ == "__main__":
    key = jax.random.PRNGKey(0)
    k_x, k_x2, k_p = jax.random.split(key, 3)

    w_t, gamma, beta = init_params(k_p)

    # Small CIFAR-10-shaped batch.
    B = 8
    x = jax.random.normal(k_x, (B, 3, 32, 32), dtype=jnp.float32)
    out = jax.block_until_ready(bnlnn1_forward(x, w_t, gamma, beta))
    ref = reference_forward(x, w_t, gamma, beta)
    assert out.shape == (B, OUT_FEATURES)
    assert jnp.allclose(out, ref, atol=1e-4, rtol=1e-4), "mismatch vs reference (B=8)"

    # Non-tile-aligned batch: exercises the padded-tail mask in the BN statistics.
    B2 = 12
    x2 = jax.random.normal(k_x2, (B2, 3, 32, 32), dtype=jnp.float32)
    out2 = jax.block_until_ready(bnlnn1_forward(x2, w_t, gamma, beta))
    ref2 = reference_forward(x2, w_t, gamma, beta)
    assert out2.shape == (B2, OUT_FEATURES)
    assert jnp.allclose(out2, ref2, atol=1e-4, rtol=1e-4), "mismatch vs reference (B=12)"

    print("KERNEL_OK")
</pallas_src>

<mosaic_0001>
module attributes {stable_mosaic.version = 11 : i64} {
  func.func @bnlnn1_kernel(%arg0: i32, %arg1: memref<8x3072xf32, #tpu.memory_space<vmem>>, %arg2: memref<3072x10xf32, #tpu.memory_space<vmem>>, %arg3: memref<1x10xf32, #tpu.memory_space<vmem>>, %arg4: memref<1x10xf32, #tpu.memory_space<vmem>>, %arg5: memref<8x10xf32, #tpu.memory_space<vmem>>, %arg6: memref<1x10xf32, #tpu.memory_space<vmem>>, %arg7: memref<1x10xf32, #tpu.memory_space<vmem>>) attributes {dimension_semantics = [#tpu.dimension_semantics<arbitrary>], iteration_bounds = array<i64: 1>, scalar_prefetch = 0 : i64, scratch_operands = 2 : i64, tpu.core_type = #tpu.core_type<tc>, window_params = [{transform_indices = @transform_0, window_bounds = array<i64: 8, 3072>}, {pipeline_mode = #tpu.pipeline_mode<synchronous>, transform_indices = @transform_1, window_bounds = array<i64: 3072, 10>}, {pipeline_mode = #tpu.pipeline_mode<synchronous>, transform_indices = @transform_2, window_bounds = array<i64: 1, 10>}, {pipeline_mode = #tpu.pipeline_mode<synchronous>, transform_indices = @transform_3, window_bounds = array<i64: 1, 10>}, {pipeline_mode = #tpu.pipeline_mode<synchronous>, transform_indices = @transform_4, window_bounds = array<i64: 8, 10>}]} {
    %c0_i32 = arith.constant 0 : i32
    %0 = arith.cmpi eq, %arg0, %c0_i32 : i32
    %1 = arith.extui %0 : i1 to i32
    %c0_i32_0 = arith.constant 0 : i32
    %2 = arith.cmpi ne, %1, %c0_i32_0 : i32
    scf.if %2 {
      %cst_17 = arith.constant 0.000000e+00 : f32
      %24 = vector.broadcast %cst_17 : f32 to vector<1x10xf32>
      %c0_18 = arith.constant 0 : index
      %c0_19 = arith.constant 0 : index
      %25 = vector.load %arg6[%c0_18, %c0_19] : memref<1x10xf32, #tpu.memory_space<vmem>>, vector<1x10xf32>
      tpu.vector_store %arg6[%c0_18, %c0_19], %24 {strides = array<i32>} : memref<1x10xf32, #tpu.memory_space<vmem>>, vector<1x10xf32>,
      %cst_20 = arith.constant 0.000000e+00 : f32
      %26 = vector.broadcast %cst_20 : f32 to vector<1x10xf32>
      %c0_21 = arith.constant 0 : index
      %c0_22 = arith.constant 0 : index
      %27 = vector.load %arg7[%c0_21, %c0_22] : memref<1x10xf32, #tpu.memory_space<vmem>>, vector<1x10xf32>
      tpu.vector_store %arg7[%c0_21, %c0_22], %26 {strides = array<i32>} : memref<1x10xf32, #tpu.memory_space<vmem>>, vector<1x10xf32>,
    } else {
    }
    %c0 = arith.constant 0 : index
    %c0_1 = arith.constant 0 : index
    %3 = vector.load %arg1[%c0, %c0_1] : memref<8x3072xf32, #tpu.memory_space<vmem>>, vector<8x3072xf32>
    %c0_2 = arith.constant 0 : index
    %c0_3 = arith.constant 0 : index
    %4 = vector.load %arg2[%c0_2, %c0_3] : memref<3072x10xf32, #tpu.memory_space<vmem>>, vector<3072x10xf32>
    %cst = arith.constant dense<0.000000e+00> : vector<8x10xf32>
    %5 = tpu.matmul %3, %4, %cst {dimension_numbers = #tpu.dot_dimension_numbers<[1], [0], [0], [1], [0, 0, 1, 1], [], []>} : vector<8x3072xf32>, vector<3072x10xf32>, vector<8x10xf32> -> vector<8x10xf32>
    %c0_4 = arith.constant 0 : index
    %c0_5 = arith.constant 0 : index
    %6 = vector.load %arg6[%c0_4, %c0_5] : memref<1x10xf32, #tpu.memory_space<vmem>>, vector<1x10xf32>
    %cst_6 = arith.constant dense<0.000000e+00> : vector<10xf32>
    %7 = vector.multi_reduction <add>, %5, %cst_6 [0] : vector<8x10xf32> to vector<10xf32>
    %8 = vector.shape_cast %7 : vector<10xf32> to vector<1x10xf32>
    %9 = arith.addf %6, %8 : vector<1x10xf32>
    %c0_7 = arith.constant 0 : index
    %c0_8 = arith.constant 0 : index
    %10 = vector.load %arg6[%c0_7, %c0_8] : memref<1x10xf32, #tpu.memory_space<vmem>>, vector<1x10xf32>
    tpu.vector_store %arg6[%c0_7, %c0_8], %9 {strides = array<i32>} : memref<1x10xf32, #tpu.memory_space<vmem>>, vector<1x10xf32>,
    %c0_9 = arith.constant 0 : index
    %c0_10 = arith.constant 0 : index
    %11 = vector.load %arg7[%c0_9, %c0_10] : memref<1x10xf32, #tpu.memory_space<vmem>>, vector<1x10xf32>
    %12 = arith.mulf %5, %5 : vector<8x10xf32>
    %cst_11 = arith.constant dense<0.000000e+00> : vector<10xf32>
    %13 = vector.multi_reduction <add>, %12, %cst_11 [0] : vector<8x10xf32> to vector<10xf32>
    %14 = vector.shape_cast %13 : vector<10xf32> to vector<1x10xf32>
    %15 = arith.addf %11, %14 : vector<1x10xf32>
    %c0_12 = arith.constant 0 : index
    %c0_13 = arith.constant 0 : index
    %16 = vector.load %arg7[%c0_12, %c0_13] : memref<1x10xf32, #tpu.memory_space<vmem>>, vector<1x10xf32>
    tpu.vector_store %arg7[%c0_12, %c0_13], %15 {strides = array<i32>} : memref<1x10xf32, #tpu.memory_space<vmem>>, vector<1x10xf32>,
    %c8_i32 = arith.constant 8 : i32
    %17 = arith.muli %arg0, %c8_i32 : i32
    %18 = tpu.assume_multiple %17, 8 : i32
    %19 = arith.index_cast %18 : i32 to index
    %c0_14 = arith.constant 0 : index
    %20 = vector.load %arg5[%19, %c0_14] : memref<8x10xf32, #tpu.memory_space<vmem>>, vector<8x10xf32>
    tpu.vector_store %arg5[%19, %c0_14], %5 {strides = array<i32>} : memref<8x10xf32, #tpu.memory_space<vmem>>, vector<8x10xf32>,
    %c0_i32_15 = arith.constant 0 : i32
    %21 = arith.cmpi eq, %arg0, %c0_i32_15 : i32
    %22 = arith.extui %21 : i1 to i32
    %c0_i32_16 = arith.constant 0 : i32
    %23 = arith.cmpi ne, %22, %c0_i32_16 : i32
    scf.if %23 {
      %c0_17 = arith.constant 0 : index
      %c0_18 = arith.constant 0 : index
      %24 = vector.load %arg6[%c0_17, %c0_18] : memref<1x10xf32, #tpu.memory_space<vmem>>, vector<1x10xf32>
      %cst_19 = arith.constant 1.250000e-01 : f32
      %25 = vector.broadcast %cst_19 : f32 to vector<1x10xf32>
      %26 = arith.mulf %24, %25 : vector<1x10xf32>
      %c0_20 = arith.constant 0 : index
      %c0_21 = arith.constant 0 : index
      %27 = vector.load %arg7[%c0_20, %c0_21] : memref<1x10xf32, #tpu.memory_space<vmem>>, vector<1x10xf32>
      %cst_22 = arith.constant 1.250000e-01 : f32
      %28 = vector.broadcast %cst_22 : f32 to vector<1x10xf32>
      %29 = arith.mulf %27, %28 : vector<1x10xf32>
      %30 = arith.mulf %26, %26 : vector<1x10xf32>
      %31 = arith.subf %29, %30 : vector<1x10xf32>
      %cst_23 = arith.constant 9.99999974E-6 : f32
      %32 = vector.broadcast %cst_23 : f32 to vector<1x10xf32>
      %33 = arith.addf %31, %32 : vector<1x10xf32>
      %34 = math.rsqrt %33 : vector<1x10xf32>
      %c0_24 = arith.constant 0 : index
      %c0_25 = arith.constant 0 : index
      %35 = vector.load %arg3[%c0_24, %c0_25] : memref<1x10xf32, #tpu.memory_space<vmem>>, vector<1x10xf32>
      %36 = arith.mulf %35, %34 : vector<1x10xf32>
      %c0_26 = arith.constant 0 : index
      %c0_27 = arith.constant 0 : index
      %37 = vector.load %arg4[%c0_26, %c0_27] : memref<1x10xf32, #tpu.memory_space<vmem>>, vector<1x10xf32>
      %38 = arith.mulf %26, %36 : vector<1x10xf32>
      %39 = arith.subf %37, %38 : vector<1x10xf32>
      %c0_28 = arith.constant 0 : index
      %c0_29 = arith.constant 0 : index
      %40 = vector.load %arg5[%c0_28, %c0_29] : memref<8x10xf32, #tpu.memory_space<vmem>>, vector<8x10xf32>
      %41 = vector.broadcast %36 : vector<1x10xf32> to vector<8x10xf32>
      %42 = arith.mulf %40, %41 : vector<8x10xf32>
      %43 = vector.broadcast %39 : vector<1x10xf32> to vector<8x10xf32>
      %44 = arith.addf %42, %43 : vector<8x10xf32>
      %c0_30 = arith.constant 0 : index
      %c0_31 = arith.constant 0 : index
      %45 = vector.load %arg5[%c0_30, %c0_31] : memref<8x10xf32, #tpu.memory_space<vmem>>, vector<8x10xf32>
      tpu.vector_store %arg5[%c0_30, %c0_31], %44 {strides = array<i32>} : memref<8x10xf32, #tpu.memory_space<vmem>>, vector<8x10xf32>,
    } else {
    }
    return
  }
  func.func @transform_0(%arg0: i32) -> (i32, i32) {
    %c0_i32 = arith.constant 0 : i32
    %c0_i32_0 = arith.constant 0 : i32
    return %arg0, %c0_i32 : i32, i32
  }
  func.func @transform_1(%arg0: i32) -> (i32, i32) {
    %c0_i32 = arith.constant 0 : i32
    %c0_i32_0 = arith.constant 0 : i32
    %c0_i32_1 = arith.constant 0 : i32
    return %c0_i32, %c0_i32_0 : i32, i32
  }
  func.func @transform_2(%arg0: i32) -> (i32, i32) {
    %c0_i32 = arith.constant 0 : i32
    %c0_i32_0 = arith.constant 0 : i32
    %c0_i32_1 = arith.constant 0 : i32
    return %c0_i32, %c0_i32_0 : i32, i32
  }
  func.func @transform_3(%arg0: i32) -> (i32, i32) {
    %c0_i32 = arith.constant 0 : i32
    %c0_i32_0 = arith.constant 0 : i32
    %c0_i32_1 = arith.constant 0 : i32
    return %c0_i32, %c0_i32_0 : i32, i32
  }
  func.func @transform_4(%arg0: i32) -> (i32, i32) {
    %c0_i32 = arith.constant 0 : i32
    %c0_i32_0 = arith.constant 0 : i32
    %c0_i32_1 = arith.constant 0 : i32
    return %c0_i32, %c0_i32_0 : i32, i32
  }
}

</mosaic_0001>

<bundles_post_ra>
// kernel: tpu_custom_call.1
= control target key start
LH: loop header
LB: loop body
LE: loop exit
PB: predicated region body
PF: predicated region fallthrough
CT: control target
= control target key end

     0   :  { %s3059_s0 = inlined_call_operand.vmem [shape: f32[8,3072], index: 0, kind: input, shape index: {}]   ;;  %s3060_s1 = inlined_call_operand.vmem [shape: f32[3072,10], index: 1, kind: input, shape index: {}]   ;;  %s3061_s2 = inlined_call_operand.vmem [shape: f32[1,10], index: 2, kind: input, shape index: {}]   ;;  %s3062_s3 = inlined_call_operand.vmem [shape: f32[1,10], index: 3, kind: input, shape index: {}]   ;;  %s3063_s4 = inlined_call_operand.hbm [shape: f32[8,10], index: 4, kind: output, shape index: {}]  }
   0x1   :  { %v80_v0 = vld [vmem:[%s3060_s1 + $0xf8] sm:$0xff]  ;;  %v79_v4 = vld [vmem:[%s3060_s1 + $0xf0] sm:$0xff]  ;;  %v78_v8 = vld [vmem:[%s3060_s1 + $0xe8] sm:$0xff] }
   0x2   :  { %v112_v1 = vld [vmem:[%s3060_s1 + $0x1f8] sm:$0xff]  ;;  %1345 = vmatprep.subr.mxu0 %v80_v0  ;;  %v111_v5 = vld [vmem:[%s3060_s1 + $0x1f0] sm:$0xff]  ;;  %v110_v9 = vld [vmem:[%s3060_s1 + $0x1e8] sm:$0xff] }
   0x3   :  { %v64_v2 = vld [vmem:[%s3060_s1 + $0x78] sm:$0xff]  ;;  %1380 = vmatprep.subr.mxu1 %v112_v1  ;;  %v63_v6 = vld [vmem:[%s3060_s1 + $0x70] sm:$0xff]  ;;  %v62_v10 = vld [vmem:[%s3060_s1 + $0x68] sm:$0xff] }
   0x4   :  { %v96_v3 = vld [vmem:[%s3060_s1 + $0x178] sm:$0xff]  ;;  %1346 = vmatpush3.msra.mxu0 %v64_v2  ;;  %v95_v7 = vld [vmem:[%s3060_s1 + $0x170] sm:$0xff]  ;;  %v94_v11 = vld [vmem:[%s3060_s1 + $0x168] sm:$0xff] }
   0x5   :  { %1381 = vmatpush3.msra.mxu1 %v96_v3  ;;  %1347 = vmatprep.subr.mxu0 %v79_v4  ;;  %v77_v12 = vld [vmem:[%s3060_s1 + $0xe0] sm:$0xff]  ;;  %v76_v16 = vld [vmem:[%s3060_s1 + $0xd8] sm:$0xff]  ;;  %v75_v20 = vld [vmem:[%s3060_s1 + $0xd0] sm:$0xff] }
   0x6   :  { %1382 = vmatprep.subr.mxu1 %v111_v5  ;;  %1348 = vmatpush3.msra.mxu0 %v63_v6  ;;  %v109_v13 = vld [vmem:[%s3060_s1 + $0x1e0] sm:$0xff]  ;;  %v108_v17 = vld [vmem:[%s3060_s1 + $0x1d8] sm:$0xff]  ;;  %v107_v21 = vld [vmem:[%s3060_s1 + $0x1d0] sm:$0xff] }
   0x7   :  { %1383 = vmatpush3.msra.mxu1 %v95_v7  ;;  %1349 = vmatprep.subr.mxu0 %v78_v8  ;;  %v61_v14 = vld [vmem:[%s3060_s1 + $0x60] sm:$0xff]  ;;  %v60_v18 = vld [vmem:[%s3060_s1 + $0x58] sm:$0xff]  ;;  %v59_v22 = vld [vmem:[%s3060_s1 + $0x50] sm:$0xff] }
   0x8   :  { %1384 = vmatprep.subr.mxu1 %v110_v9  ;;  %v93_v15 = vld [vmem:[%s3060_s1 + $0x160] sm:$0xff]  ;;  %1350 = vmatpush3.msra.mxu0 %v62_v10  ;;  %v92_v19 = vld [vmem:[%s3060_s1 + $0x158] sm:$0xff]  ;;  %v91_v23 = vld [vmem:[%s3060_s1 + $0x150] sm:$0xff] }
   0x9   :  { %1385 = vmatpush3.msra.mxu1 %v94_v11  ;;  %1351 = vmatprep.subr.mxu0 %v77_v12  ;;  %v74_v24 = vld [vmem:[%s3060_s1 + $0xc8] sm:$0xff]  ;;  %v73_v28 = vld [vmem:[%s3060_s1 + $0xc0] sm:$0xff]  ;;  %v72_v32 = vld [vmem:[%s3060_s1 + $0xb8] sm:$0xff] }
   0xa   :  { %1386 = vmatprep.subr.mxu1 %v109_v13  ;;  %1352 = vmatpush3.msra.mxu0 %v61_v14  ;;  %v106_v25 = vld [vmem:[%s3060_s1 + $0x1c8] sm:$0xff]  ;;  %v105_v29 = vld [vmem:[%s3060_s1 + $0x1c0] sm:$0xff]  ;;  %v104_v33 = vld [vmem:[%s3060_s1 + $0x1b8] sm:$0xff] }
   0xb   :  { %1387 = vmatpush3.msra.mxu1 %v93_v15  ;;  %1353 = vmatprep.subr.mxu0 %v76_v16  ;;  %v58_v26 = vld [vmem:[%s3060_s1 + $0x48] sm:$0xff]  ;;  %v57_v30 = vld [vmem:[%s3060_s1 + $0x40] sm:$0xff]  ;;  %v56_v34 = vld [vmem:[%s3060_s1 + $0x38] sm:$0xff] }
   0xc   :  { %1388 = vmatprep.subr.mxu1 %v108_v17  ;;  %1354 = vmatpush3.msra.mxu0 %v60_v18  ;;  %v90_v27 = vld [vmem:[%s3060_s1 + $0x148] sm:$0xff]  ;;  %v89_v31 = vld [vmem:[%s3060_s1 + $0x140] sm:$0xff]  ;;  %v88_v35 = vld [vmem:[%s3060_s1 + $0x138] sm:$0xff] }
   0xd   :  { %1389 = vmatpush3.msra.mxu1 %v92_v19  ;;  %1355 = vmatprep.subr.mxu0 %v75_v20  ;;  %v71_v36 = vld [vmem:[%s3060_s1 + $0xb0] sm:$0xff]  ;;  %v70_v40 = vld [vmem:[%s3060_s1 + $0xa8] sm:$0xff]  ;;  %v69_v44 = vld [vmem:[%s3060_s1 + $0xa0] sm:$0xff] }
   0xe   :  { %1390 = vmatprep.subr.mxu1 %v107_v21  ;;  %1356 = vmatpush3.msra.mxu0 %v59_v22  ;;  %v103_v37 = vld [vmem:[%s3060_s1 + $0x1b0] sm:$0xff]  ;;  %v102_v41 = vld [vmem:[%s3060_s1 + $0x1a8] sm:$0xff]  ;;  %v101_v45 = vld [vmem:[%s3060_s1 + $0x1a0] sm:$0xff] }
   0xf   :  { %1391 = vmatpush3.msra.mxu1 %v91_v23  ;;  %1357 = vmatprep.subr.mxu0 %v74_v24  ;;  %v55_v38 = vld [vmem:[%s3060_s1 + $0x30] sm:$0xff]  ;;  %v54_v42 = vld [vmem:[%s3060_s1 + $0x28] sm:$0xff]  ;;  %v53_v46 = vld [vmem:[%s3060_s1 + $0x20] sm:$0xff] }
  0x10   :  { %1392 = vmatprep.subr.mxu1 %v106_v25  ;;  %1358 = vmatpush3.msra.mxu0 %v58_v26  ;;  %v87_v39 = vld [vmem:[%s3060_s1 + $0x130] sm:$0xff]  ;;  %v86_v43 = vld [vmem:[%s3060_s1 + $0x128] sm:$0xff]  ;;  %v85_v47 = vld [vmem:[%s3060_s1 + $0x120] sm:$0xff] }
  0x11   :  { %1393 = vmatpush3.msra.mxu1 %v90_v27  ;;  %1359 = vmatprep.subr.mxu0 %v73_v28  ;;  %v68_v48 = vld [vmem:[%s3060_s1 + $0x98] sm:$0xff]  ;;  %v67_v52 = vld [vmem:[%s3060_s1 + $0x90] sm:$0xff]  ;;  %v66_v56 = vld [vmem:[%s3060_s1 + $0x88] sm:$0xff] }
  0x12   :  { %1394 = vmatprep.subr.mxu1 %v105_v29  ;;  %1360 = vmatpush3.msra.mxu0 %v57_v30  ;;  %v100_v49 = vld [vmem:[%s3060_s1 + $0x198] sm:$0xff]  ;;  %v99_v53 = vld [vmem:[%s3060_s1 + $0x190] sm:$0xff]  ;;  %v98_v57 = vld [vmem:[%s3060_s1 + $0x188] sm:$0xff] }
  0x13   :  { %1395 = vmatpush3.msra.mxu1 %v89_v31  ;;  %1361 = vmatprep.subr.mxu0 %v72_v32  ;;  %v52_v50 = vld [vmem:[%s3060_s1 + $0x18] sm:$0xff]  ;;  %v51_v54 = vld [vmem:[%s3060_s1 + $0x10] sm:$0xff]  ;;  %v50_v58 = vld [vmem:[%s3060_s1 + $0x8] sm:$0xff] }
  0x14   :  { %1396 = vmatprep.subr.mxu1 %v104_v33  ;;  %1362 = vmatpush3.msra.mxu0 %v56_v34  ;;  %v84_v51 = vld [vmem:[%s3060_s1 + $0x118] sm:$0xff]  ;;  %v83_v55 = vld [vmem:[%s3060_s1 + $0x110] sm:$0xff]  ;;  %v82_v59 = vld [vmem:[%s3060_s1 + $0x108] sm:$0xff] }
  0x15   :  { %1397 = vmatpush3.msra.mxu1 %v88_v35  ;;  %1363 = vmatprep.subr.mxu0 %v71_v36  ;;  %v65_v60 = vld [vmem:[%s3060_s1 + $0x80] sm:$0xff]  ;;  %v26_v63 = vld [vmem:[%s3059_s0 + $0x8] sm:$0xff]  ;;  %v28_v1 = vld [vmem:[%s3059_s0 + $0x18] sm:$0xff] }
  0x16   :  { %1398 = vmatprep.subr.mxu1 %v103_v37  ;;  %1364 = vmatpush3.msra.mxu0 %v55_v38  ;;  %v97_v61 = vld [vmem:[%s3060_s1 + $0x180] sm:$0xff]  ;;  %v27_v3 = vld [vmem:[%s3059_s0 + $0x10] sm:$0xff]  ;;  %v144_v4 = vld [vmem:[%s3060_s1 + $0x2f8] sm:$0xff] }
  0x17   :  { %1399 = vmatpush3.msra.mxu1 %v87_v39  ;;  %1365 = vmatprep.subr.mxu0 %v70_v40  ;;  %v49_v62 = vld [vmem:[%s3060_s1] sm:$0xff]  ;;  %v176_v5 = vld [vmem:[%s3060_s1 + $0x3f8] sm:$0xff]  ;;  %v143_v8 = vld [vmem:[%s3060_s1 + $0x2f0] sm:$0xff] }
  0x18   :  { %1400 = vmatprep.subr.mxu1 %v102_v41  ;;  %1366 = vmatpush3.msra.mxu0 %v54_v42  ;;  %v81_v0 = vld [vmem:[%s3060_s1 + $0x100] sm:$0xff]  ;;  %v128_v6 = vld [vmem:[%s3060_s1 + $0x278] sm:$0xff]  ;;  %v175_v9 = vld [vmem:[%s3060_s1 + $0x3f0] sm:$0xff] }
  0x19   :  { %1401 = vmatpush3.msra.mxu1 %v86_v43  ;;  %1367 = vmatprep.subr.mxu0 %v69_v44  ;;  %v25_v2 = vld [vmem:[%s3059_s0] sm:$0xff]  ;;  %v160_v7 = vld [vmem:[%s3060_s1 + $0x378] sm:$0xff]  ;;  %v127_v10 = vld [vmem:[%s3060_s1 + $0x270] sm:$0xff] }
  0x1a   :  { %1402 = vmatprep.subr.mxu1 %v101_v45  ;;  %1368 = vmatpush3.msra.mxu0 %v53_v46  ;;  %v159_v11 = vld [vmem:[%s3060_s1 + $0x370] sm:$0xff]  ;;  %v142_v12 = vld [vmem:[%s3060_s1 + $0x2e8] sm:$0xff]  ;;  %v141_v16 = vld [vmem:[%s3060_s1 + $0x2e0] sm:$0xff] }
  0x1b   :  { %1403 = vmatpush3.msra.mxu1 %v85_v47  ;;  %1369 = vmatprep.subr.mxu0 %v68_v48  ;;  %v174_v13 = vld [vmem:[%s3060_s1 + $0x3e8] sm:$0xff]  ;;  %v173_v17 = vld [vmem:[%s3060_s1 + $0x3e0] sm:$0xff]  ;;  %v140_v20 = vld [vmem:[%s3060_s1 + $0x2d8] sm:$0xff] }
  0x1c   :  { %1404 = vmatprep.subr.mxu1 %v100_v49  ;;  %1370 = vmatpush3.msra.mxu0 %v52_v50  ;;  %v126_v14 = vld [vmem:[%s3060_s1 + $0x268] sm:$0xff]  ;;  %v125_v18 = vld [vmem:[%s3060_s1 + $0x260] sm:$0xff]  ;;  %v172_v21 = vld [vmem:[%s3060_s1 + $0x3d8] sm:$0xff] }
  0x1d   :  { %1405 = vmatpush3.msra.mxu1 %v84_v51  ;;  %1371 = vmatprep.subr.mxu0 %v67_v52  ;;  %v158_v15 = vld [vmem:[%s3060_s1 + $0x368] sm:$0xff]  ;;  %v157_v19 = vld [vmem:[%s3060_s1 + $0x360] sm:$0xff]  ;;  %v124_v22 = vld [vmem:[%s3060_s1 + $0x258] sm:$0xff] }
  0x1e   :  { %1406 = vmatprep.subr.mxu1 %v99_v53  ;;  %1372 = vmatpush3.msra.mxu0 %v51_v54  ;;  %v156_v23 = vld [vmem:[%s3060_s1 + $0x358] sm:$0xff]  ;;  %v139_v24 = vld [vmem:[%s3060_s1 + $0x2d0] sm:$0xff]  ;;  %v138_v28 = vld [vmem:[%s3060_s1 + $0x2c8] sm:$0xff] }
  0x1f   :  { %1407 = vmatpush3.msra.mxu1 %v83_v55  ;;  %1373 = vmatprep.subr.mxu0 %v66_v56  ;;  %v171_v25 = vld [vmem:[%s3060_s1 + $0x3d0] sm:$0xff]  ;;  %v170_v29 = vld [vmem:[%s3060_s1 + $0x3c8] sm:$0xff]  ;;  %v137_v32 = vld [vmem:[%s3060_s1 + $0x2c0] sm:$0xff] }
  0x20   :  { %1408 = vmatprep.subr.mxu1 %v98_v57  ;;  %1374 = vmatpush3.msra.mxu0 %v50_v58  ;;  %v123_v26 = vld [vmem:[%s3060_s1 + $0x250] sm:$0xff]  ;;  %v122_v30 = vld [vmem:[%s3060_s1 + $0x248] sm:$0xff]  ;;  %v169_v33 = vld [vmem:[%s3060_s1 + $0x3c0] sm:$0xff] }
  0x21   :  { %1409 = vmatpush3.msra.mxu1 %v82_v59  ;;  %1375 = vmatprep.subr.mxu0 %v65_v60  ;;  %v155_v27 = vld [vmem:[%s3060_s1 + $0x350] sm:$0xff]  ;;  %v154_v31 = vld [vmem:[%s3060_s1 + $0x348] sm:$0xff]  ;;  %v121_v34 = vld [vmem:[%s3060_s1 + $0x240] sm:$0xff] }
  0x22   :  { %1410 = vmatprep.subr.mxu1 %v97_v61  ;;  %1376 = vmatpush3.msra.mxu0 %v49_v62  ;;  %v153_v35 = vld [vmem:[%s3060_s1 + $0x340] sm:$0xff]  ;;  %v136_v36 = vld [vmem:[%s3060_s1 + $0x2b8] sm:$0xff]  ;;  %v135_v40 = vld [vmem:[%s3060_s1 + $0x2b0] sm:$0xff] }
  0x23   :  { %497 = vmatprep.mubr.f32.mxu0 %v26_v63  ;;  %1411 = vmatpush3.msra.mxu1 %v81_v0  ;;  %v168_v37 = vld [vmem:[%s3060_s1 + $0x3b8] sm:$0xff]  ;;  %v167_v41 = vld [vmem:[%s3060_s1 + $0x3b0] sm:$0xff]  ;;  %v134_v44 = vld [vmem:[%s3060_s1 + $0x2a8] sm:$0xff] }
  0x24   :  { %567 = vmatprep.mubr.f32.mxu1 %v28_v1  ;;  %498 = vmatmul.mubr.f32.vlgmr.msra.gmra.mxu0 %v25_v2  ;;  %v120_v38 = vld [vmem:[%s3060_s1 + $0x238] sm:$0xff]  ;;  %v119_v42 = vld [vmem:[%s3060_s1 + $0x230] sm:$0xff]  ;;  %v166_v45 = vld [vmem:[%s3060_s1 + $0x3a8] sm:$0xff] }
  0x25   :  { %568 = vmatmul.mubr.f32.vlgmr.msra.gmra.mxu1 %v27_v3  ;;  %1415 = vmatprep.subr.mxu0 %v144_v4  ;;  %v152_v39 = vld [vmem:[%s3060_s1 + $0x338] sm:$0xff]  ;;  %v151_v43 = vld [vmem:[%s3060_s1 + $0x330] sm:$0xff]  ;;  %v118_v46 = vld [vmem:[%s3060_s1 + $0x228] sm:$0xff] }
  0x26   :  { %1450 = vmatprep.subr.mxu1 %v176_v5  ;;  %1416 = vmatpush3.msra.mxu0 %v128_v6  ;;  %v150_v47 = vld [vmem:[%s3060_s1 + $0x328] sm:$0xff]  ;;  %v133_v48 = vld [vmem:[%s3060_s1 + $0x2a0] sm:$0xff]  ;;  %v132_v52 = vld [vmem:[%s3060_s1 + $0x298] sm:$0xff] }
  0x27   :  { %1451 = vmatpush3.msra.mxu1 %v160_v7  ;;  %1417 = vmatprep.subr.mxu0 %v143_v8  ;;  %v165_v49 = vld [vmem:[%s3060_s1 + $0x3a0] sm:$0xff]  ;;  %v164_v53 = vld [vmem:[%s3060_s1 + $0x398] sm:$0xff]  ;;  %v131_v56 = vld [vmem:[%s3060_s1 + $0x290] sm:$0xff] }
  0x28   :  { %1452 = vmatprep.subr.mxu1 %v175_v9  ;;  %1418 = vmatpush3.msra.mxu0 %v127_v10  ;;  %v117_v50 = vld [vmem:[%s3060_s1 + $0x220] sm:$0xff]  ;;  %v116_v54 = vld [vmem:[%s3060_s1 + $0x218] sm:$0xff]  ;;  %v163_v57 = vld [vmem:[%s3060_s1 + $0x390] sm:$0xff] }
  0x29   :  { %1453 = vmatpush3.msra.mxu1 %v159_v11  ;;  %1419 = vmatprep.subr.mxu0 %v142_v12  ;;  %v149_v51 = vld [vmem:[%s3060_s1 + $0x320] sm:$0xff]  ;;  %v148_v55 = vld [vmem:[%s3060_s1 + $0x318] sm:$0xff]  ;;  %v115_v58 = vld [vmem:[%s3060_s1 + $0x210] sm:$0xff] }
  0x2a   :  { %1454 = vmatprep.subr.mxu1 %v174_v13  ;;  %1420 = vmatpush3.msra.mxu0 %v126_v14  ;;  %v147_v59 = vld [vmem:[%s3060_s1 + $0x310] sm:$0xff]  ;;  %v130_v60 = vld [vmem:[%s3060_s1 + $0x288] sm:$0xff]  ;;  %v129_v0 = vld [vmem:[%s3060_s1 + $0x280] sm:$0xff] }
  0x2b   :  { %1455 = vmatpush3.msra.mxu1 %v158_v15  ;;  %1421 = vmatprep.subr.mxu0 %v141_v16  ;;  %v162_v61 = vld [vmem:[%s3060_s1 + $0x388] sm:$0xff]  ;;  %v161_v1 = vld [vmem:[%s3060_s1 + $0x380] sm:$0xff]  ;;  %v32_v6 = vld [vmem:[%s3059_s0 + $0x38] sm:$0xff] }
  0x2c   :  { %1456 = vmatprep.subr.mxu1 %v173_v17  ;;  %1422 = vmatpush3.msra.mxu0 %v125_v18  ;;  %v114_v62 = vld [vmem:[%s3060_s1 + $0x208] sm:$0xff]  ;;  %v113_v2 = vld [vmem:[%s3060_s1 + $0x200] sm:$0xff]  ;;  %v208_v7 = vld [vmem:[%s3060_s1 + $0x4f8] sm:$0xff] }
  0x2d   :  { %1457 = vmatpush3.msra.mxu1 %v157_v19  ;;  %1423 = vmatprep.subr.mxu0 %v140_v20  ;;  %v146_v63 = vld [vmem:[%s3060_s1 + $0x308] sm:$0xff]  ;;  %v145_v4 = vld [vmem:[%s3060_s1 + $0x300] sm:$0xff]  ;;  %v240_v8 = vld [vmem:[%s3060_s1 + $0x5f8] sm:$0xff] }
  0x2e   :  { %1458 = vmatprep.subr.mxu1 %v172_v21  ;;  %1424 = vmatpush3.msra.mxu0 %v124_v22  ;;  %v30_v3 = vld [vmem:[%s3059_s0 + $0x28] sm:$0xff]  ;;  %v29_v5 = vld [vmem:[%s3059_s0 + $0x20] sm:$0xff]  ;;  %v31_v9 = vld [vmem:[%s3059_s0 + $0x30] sm:$0xff] }
  0x2f   :  { %1459 = vmatpush3.msra.mxu1 %v156_v23  ;;  %1425 = vmatprep.subr.mxu0 %v139_v24  ;;  %v192_v10 = vld [vmem:[%s3060_s1 + $0x478] sm:$0xff]  ;;  %v207_v12 = vld [vmem:[%s3060_s1 + $0x4f0] sm:$0xff]  ;;  %v206_v16 = vld [vmem:[%s3060_s1 + $0x4e8] sm:$0xff] }
  0x30   :  { %1460 = vmatprep.subr.mxu1 %v171_v25  ;;  %1426 = vmatpush3.msra.mxu0 %v123_v26  ;;  %v224_v11 = vld [vmem:[%s3060_s1 + $0x578] sm:$0xff]  ;;  %v239_v13 = vld [vmem:[%s3060_s1 + $0x5f0] sm:$0xff]  ;;  %v238_v17 = vld [vmem:[%s3060_s1 + $0x5e8] sm:$0xff] }
  0x31   :  { %1461 = vmatpush3.msra.mxu1 %v155_v27  ;;  %1427 = vmatprep.subr.mxu0 %v138_v28  ;;  %v191_v14 = vld [vmem:[%s3060_s1 + $0x470] sm:$0xff]  ;;  %v190_v18 = vld [vmem:[%s3060_s1 + $0x468] sm:$0xff]  ;;  %v205_v20 = vld [vmem:[%s3060_s1 + $0x4e0] sm:$0xff] }
  0x32   :  { %1462 = vmatprep.subr.mxu1 %v170_v29  ;;  %1428 = vmatpush3.msra.mxu0 %v122_v30  ;;  %v223_v15 = vld [vmem:[%s3060_s1 + $0x570] sm:$0xff]  ;;  %v222_v19 = vld [vmem:[%s3060_s1 + $0x568] sm:$0xff]  ;;  %v237_v21 = vld [vmem:[%s3060_s1 + $0x5e0] sm:$0xff] }
  0x33   :  { %1463 = vmatpush3.msra.mxu1 %v154_v31  ;;  %1429 = vmatprep.subr.mxu0 %v137_v32  ;;  %v189_v22 = vld [vmem:[%s3060_s1 + $0x460] sm:$0xff]  ;;  %v204_v24 = vld [vmem:[%s3060_s1 + $0x4d8] sm:$0xff]  ;;  %v203_v28 = vld [vmem:[%s3060_s1 + $0x4d0] sm:$0xff] }
  0x34   :  { %1464 = vmatprep.subr.mxu1 %v169_v33  ;;  %1430 = vmatpush3.msra.mxu0 %v121_v34  ;;  %v221_v23 = vld [vmem:[%s3060_s1 + $0x560] sm:$0xff]  ;;  %v236_v25 = vld [vmem:[%s3060_s1 + $0x5d8] sm:$0xff]  ;;  %v235_v29 = vld [vmem:[%s3060_s1 + $0x5d0] sm:$0xff] }
  0x35   :  { %1465 = vmatpush3.msra.mxu1 %v153_v35  ;;  %1431 = vmatprep.subr.mxu0 %v136_v36  ;;  %v188_v26 = vld [vmem:[%s3060_s1 + $0x458] sm:$0xff]  ;;  %v187_v30 = vld [vmem:[%s3060_s1 + $0x450] sm:$0xff]  ;;  %v202_v32 = vld [vmem:[%s3060_s1 + $0x4c8] sm:$0xff] }
  0x36   :  { %1466 = vmatprep.subr.mxu1 %v168_v37  ;;  %1432 = vmatpush3.msra.mxu0 %v120_v38  ;;  %v220_v27 = vld [vmem:[%s3060_s1 + $0x558] sm:$0xff]  ;;  %v219_v31 = vld [vmem:[%s3060_s1 + $0x550] sm:$0xff]  ;;  %v234_v33 = vld [vmem:[%s3060_s1 + $0x5c8] sm:$0xff] }
  0x37   :  { %1467 = vmatpush3.msra.mxu1 %v152_v39  ;;  %1433 = vmatprep.subr.mxu0 %v135_v40  ;;  %v186_v34 = vld [vmem:[%s3060_s1 + $0x448] sm:$0xff]  ;;  %v201_v36 = vld [vmem:[%s3060_s1 + $0x4c0] sm:$0xff]  ;;  %v200_v40 = vld [vmem:[%s3060_s1 + $0x4b8] sm:$0xff] }
  0x38   :  { %1468 = vmatprep.subr.mxu1 %v167_v41  ;;  %1434 = vmatpush3.msra.mxu0 %v119_v42  ;;  %v218_v35 = vld [vmem:[%s3060_s1 + $0x548] sm:$0xff]  ;;  %v233_v37 = vld [vmem:[%s3060_s1 + $0x5c0] sm:$0xff]  ;;  %v232_v41 = vld [vmem:[%s3060_s1 + $0x5b8] sm:$0xff] }
  0x39   :  { %1469 = vmatpush3.msra.mxu1 %v151_v43  ;;  %1435 = vmatprep.subr.mxu0 %v134_v44  ;;  %v185_v38 = vld [vmem:[%s3060_s1 + $0x440] sm:$0xff]  ;;  %v184_v42 = vld [vmem:[%s3060_s1 + $0x438] sm:$0xff]  ;;  %v199_v44 = vld [vmem:[%s3060_s1 + $0x4b0] sm:$0xff] }
  0x3a   :  { %1470 = vmatprep.subr.mxu1 %v166_v45  ;;  %1436 = vmatpush3.msra.mxu0 %v118_v46  ;;  %v217_v39 = vld [vmem:[%s3060_s1 + $0x540] sm:$0xff]  ;;  %v216_v43 = vld [vmem:[%s3060_s1 + $0x538] sm:$0xff]  ;;  %v231_v45 = vld [vmem:[%s3060_s1 + $0x5b0] sm:$0xff] }
  0x3b   :  { %1471 = vmatpush3.msra.mxu1 %v150_v47  ;;  %1437 = vmatprep.subr.mxu0 %v133_v48  ;;  %v183_v46 = vld [vmem:[%s3060_s1 + $0x430] sm:$0xff]  ;;  %v198_v48 = vld [vmem:[%s3060_s1 + $0x4a8] sm:$0xff] }
  0x3c   :  { %1472 = vmatprep.subr.mxu1 %v165_v49  ;;  %1438 = vmatpush3.msra.mxu0 %v117_v50  ;;  %v215_v47 = vld [vmem:[%s3060_s1 + $0x530] sm:$0xff]  ;;  %v230_v49 = vld [vmem:[%s3060_s1 + $0x5a8] sm:$0xff] }
  0x3d   :  { %1473 = vmatpush3.msra.mxu1 %v149_v51  ;;  %1439 = vmatprep.subr.mxu0 %v132_v52  ;;  %v182_v50 = vld [vmem:[%s3060_s1 + $0x428] sm:$0xff]  ;;  %v197_v52 = vld [vmem:[%s3060_s1 + $0x4a0] sm:$0xff] }
  0x3e   :  { %1474 = vmatprep.subr.mxu1 %v164_v53  ;;  %1440 = vmatpush3.msra.mxu0 %v116_v54  ;;  %v214_v51 = vld [vmem:[%s3060_s1 + $0x528] sm:$0xff]  ;;  %v229_v53 = vld [vmem:[%s3060_s1 + $0x5a0] sm:$0xff] }
  0x3f   :  { %1475 = vmatpush3.msra.mxu1 %v148_v55  ;;  %1441 = vmatprep.subr.mxu0 %v131_v56  ;;  %v181_v54 = vld [vmem:[%s3060_s1 + $0x420] sm:$0xff]  ;;  %v196_v56 = vld [vmem:[%s3060_s1 + $0x498] sm:$0xff] }
  0x40   :  { %1476 = vmatprep.subr.mxu1 %v163_v57  ;;  %1442 = vmatpush3.msra.mxu0 %v115_v58  ;;  %v213_v55 = vld [vmem:[%s3060_s1 + $0x520] sm:$0xff]  ;;  %v228_v57 = vld [vmem:[%s3060_s1 + $0x598] sm:$0xff] }
  0x41   :  { %1477 = vmatpush3.msra.mxu1 %v147_v59  ;;  %1443 = vmatprep.subr.mxu0 %v130_v60  ;;  %v180_v58 = vld [vmem:[%s3060_s1 + $0x418] sm:$0xff]  ;;  %v195_v60 = vld [vmem:[%s3060_s1 + $0x490] sm:$0xff] }
  0x42   :  { %1478 = vmatprep.subr.mxu1 %v162_v61  ;;  %1444 = vmatpush3.msra.mxu0 %v114_v62  ;;  %v212_v59 = vld [vmem:[%s3060_s1 + $0x518] sm:$0xff]  ;;  %v227_v61 = vld [vmem:[%s3060_s1 + $0x590] sm:$0xff] }
  0x43   :  { %1479 = vmatpush3.msra.mxu1 %v146_v63  ;;  %1445 = vmatprep.subr.mxu0 %v129_v0  ;;  %v179_v62 = vld [vmem:[%s3060_s1 + $0x410] sm:$0xff]  ;;  %v194_v0 = vld [vmem:[%s3060_s1 + $0x488] sm:$0xff] }
  0x44   :  { %1480 = vmatprep.subr.mxu1 %v161_v1  ;;  %1446 = vmatpush3.msra.mxu0 %v113_v2  ;;  %v211_v63 = vld [vmem:[%s3060_s1 + $0x510] sm:$0xff]  ;;  %v226_v1 = vld [vmem:[%s3060_s1 + $0x588] sm:$0xff] }
  0x45   :  { %637 = vmatprep.mubr.f32.mxu0 %v30_v3  ;;  %1481 = vmatpush3.msra.mxu1 %v145_v4  ;;  %v178_v2 = vld [vmem:[%s3060_s1 + $0x408] sm:$0xff]  ;;  %v193_v4 = vld [vmem:[%s3060_s1 + $0x480] sm:$0xff] }
  0x46   :  { %638 = vmatmul.mubr.f32.vlgmr.msra.gmra.mxu0 %v29_v5  ;;  %707 = vmatprep.mubr.f32.mxu1 %v32_v6  ;;  %v210_v3 = vld [vmem:[%s3060_s1 + $0x508] sm:$0xff]  ;;  %v225_v5 = vld [vmem:[%s3060_s1 + $0x580] sm:$0xff] }
  0x47   :  { %1485 = vmatprep.subr.mxu0 %v208_v7  ;;  %1520 = vmatprep.subr.mxu1 %v240_v8  ;;  %v177_v6 = vld [vmem:[%s3060_s1 + $0x400] sm:$0xff]  ;;  %v34_v7 = vld [vmem:[%s3059_s0 + $0x48] sm:$0xff] }
  0x48   :  { %708 = vmatmul.mubr.f32.vlgmr.msra.gmra.mxu1 %v31_v9  ;;  %1486 = vmatpush3.msra.mxu0 %v192_v10  ;;  %v209_v8 = vld [vmem:[%s3060_s1 + $0x500] sm:$0xff]  ;;  %v36_v10 = vld [vmem:[%s3059_s0 + $0x58] sm:$0xff] }
  0x49   :  { %1521 = vmatpush3.msra.mxu1 %v224_v11  ;;  %1487 = vmatprep.subr.mxu0 %v207_v12  ;;  %v33_v9 = vld [vmem:[%s3059_s0 + $0x40] sm:$0xff]  ;;  %v272_v11 = vld [vmem:[%s3060_s1 + $0x6f8] sm:$0xff] }
  0x4a   :  { %1522 = vmatprep.subr.mxu1 %v239_v13  ;;  %1488 = vmatpush3.msra.mxu0 %v191_v14  ;;  %v304_v12 = vld [vmem:[%s3060_s1 + $0x7f8] sm:$0xff]  ;;  %v35_v13 = vld [vmem:[%s3059_s0 + $0x50] sm:$0xff] }
  0x4b   :  { %1523 = vmatpush3.msra.mxu1 %v223_v15  ;;  %1489 = vmatprep.subr.mxu0 %v206_v16  ;;  %v256_v14 = vld [vmem:[%s3060_s1 + $0x678] sm:$0xff]  ;;  %v271_v16 = vld [vmem:[%s3060_s1 + $0x6f0] sm:$0xff] }
  0x4c   :  { %1524 = vmatprep.subr.mxu1 %v238_v17  ;;  %1490 = vmatpush3.msra.mxu0 %v190_v18  ;;  %v288_v15 = vld [vmem:[%s3060_s1 + $0x778] sm:$0xff]  ;;  %v303_v17 = vld [vmem:[%s3060_s1 + $0x7f0] sm:$0xff] }
  0x4d   :  { %1525 = vmatpush3.msra.mxu1 %v222_v19  ;;  %1491 = vmatprep.subr.mxu0 %v205_v20  ;;  %v255_v18 = vld [vmem:[%s3060_s1 + $0x670] sm:$0xff]  ;;  %v270_v20 = vld [vmem:[%s3060_s1 + $0x6e8] sm:$0xff] }
  0x4e   :  { %1526 = vmatprep.subr.mxu1 %v237_v21  ;;  %1492 = vmatpush3.msra.mxu0 %v189_v22  ;;  %v287_v19 = vld [vmem:[%s3060_s1 + $0x770] sm:$0xff]  ;;  %v302_v21 = vld [vmem:[%s3060_s1 + $0x7e8] sm:$0xff] }
  0x4f   :  { %1527 = vmatpush3.msra.mxu1 %v221_v23  ;;  %1493 = vmatprep.subr.mxu0 %v204_v24  ;;  %v254_v22 = vld [vmem:[%s3060_s1 + $0x668] sm:$0xff]  ;;  %v269_v24 = vld [vmem:[%s3060_s1 + $0x6e0] sm:$0xff] }
  0x50   :  { %1528 = vmatprep.subr.mxu1 %v236_v25  ;;  %1494 = vmatpush3.msra.mxu0 %v188_v26  ;;  %v286_v23 = vld [vmem:[%s3060_s1 + $0x768] sm:$0xff]  ;;  %v301_v25 = vld [vmem:[%s3060_s1 + $0x7e0] sm:$0xff] }
  0x51   :  { %1529 = vmatpush3.msra.mxu1 %v220_v27  ;;  %1495 = vmatprep.subr.mxu0 %v203_v28  ;;  %v253_v26 = vld [vmem:[%s3060_s1 + $0x660] sm:$0xff]  ;;  %v268_v28 = vld [vmem:[%s3060_s1 + $0x6d8] sm:$0xff] }
  0x52   :  { %1530 = vmatprep.subr.mxu1 %v235_v29  ;;  %1496 = vmatpush3.msra.mxu0 %v187_v30  ;;  %v285_v27 = vld [vmem:[%s3060_s1 + $0x760] sm:$0xff]  ;;  %v300_v29 = vld [vmem:[%s3060_s1 + $0x7d8] sm:$0xff] }
  0x53   :  { %1531 = vmatpush3.msra.mxu1 %v219_v31  ;;  %1497 = vmatprep.subr.mxu0 %v202_v32  ;;  %v252_v30 = vld [vmem:[%s3060_s1 + $0x658] sm:$0xff]  ;;  %v267_v32 = vld [vmem:[%s3060_s1 + $0x6d0] sm:$0xff] }
  0x54   :  { %1532 = vmatprep.subr.mxu1 %v234_v33  ;;  %1498 = vmatpush3.msra.mxu0 %v186_v34  ;;  %v284_v31 = vld [vmem:[%s3060_s1 + $0x758] sm:$0xff]  ;;  %v299_v33 = vld [vmem:[%s3060_s1 + $0x7d0] sm:$0xff] }
  0x55   :  { %1533 = vmatpush3.msra.mxu1 %v218_v35  ;;  %1499 = vmatprep.subr.mxu0 %v201_v36  ;;  %v251_v34 = vld [vmem:[%s3060_s1 + $0x650] sm:$0xff]  ;;  %v266_v36 = vld [vmem:[%s3060_s1 + $0x6c8] sm:$0xff] }
  0x56   :  { %1534 = vmatprep.subr.mxu1 %v233_v37  ;;  %1500 = vmatpush3.msra.mxu0 %v185_v38  ;;  %v283_v35 = vld [vmem:[%s3060_s1 + $0x750] sm:$0xff]  ;;  %v298_v37 = vld [vmem:[%s3060_s1 + $0x7c8] sm:$0xff] }
  0x57   :  { %1535 = vmatpush3.msra.mxu1 %v217_v39  ;;  %1501 = vmatprep.subr.mxu0 %v200_v40  ;;  %v250_v38 = vld [vmem:[%s3060_s1 + $0x648] sm:$0xff]  ;;  %v265_v40 = vld [vmem:[%s3060_s1 + $0x6c0] sm:$0xff] }
  0x58   :  { %1536 = vmatprep.subr.mxu1 %v232_v41  ;;  %1502 = vmatpush3.msra.mxu0 %v184_v42  ;;  %v282_v39 = vld [vmem:[%s3060_s1 + $0x748] sm:$0xff]  ;;  %v297_v41 = vld [vmem:[%s3060_s1 + $0x7c0] sm:$0xff] }
  0x59   :  { %1537 = vmatpush3.msra.mxu1 %v216_v43  ;;  %1503 = vmatprep.subr.mxu0 %v199_v44  ;;  %v249_v42 = vld [vmem:[%s3060_s1 + $0x640] sm:$0xff]  ;;  %v264_v44 = vld [vmem:[%s3060_s1 + $0x6b8] sm:$0xff] }
  0x5a   :  { %1538 = vmatprep.subr.mxu1 %v231_v45  ;;  %1504 = vmatpush3.msra.mxu0 %v183_v46  ;;  %v281_v43 = vld [vmem:[%s3060_s1 + $0x740] sm:$0xff]  ;;  %v296_v45 = vld [vmem:[%s3060_s1 + $0x7b8] sm:$0xff] }
  0x5b   :  { %1539 = vmatpush3.msra.mxu1 %v215_v47  ;;  %1505 = vmatprep.subr.mxu0 %v198_v48  ;;  %v248_v46 = vld [vmem:[%s3060_s1 + $0x638] sm:$0xff]  ;;  %v263_v48 = vld [vmem:[%s3060_s1 + $0x6b0] sm:$0xff] }
  0x5c   :  { %1540 = vmatprep.subr.mxu1 %v230_v49  ;;  %1506 = vmatpush3.msra.mxu0 %v182_v50  ;;  %v280_v47 = vld [vmem:[%s3060_s1 + $0x738] sm:$0xff]  ;;  %v295_v49 = vld [vmem:[%s3060_s1 + $0x7b0] sm:$0xff] }
  0x5d   :  { %1541 = vmatpush3.msra.mxu1 %v214_v51  ;;  %1507 = vmatprep.subr.mxu0 %v197_v52  ;;  %v247_v50 = vld [vmem:[%s3060_s1 + $0x630] sm:$0xff]  ;;  %v262_v52 = vld [vmem:[%s3060_s1 + $0x6a8] sm:$0xff] }
  0x5e   :  { %1542 = vmatprep.subr.mxu1 %v229_v53  ;;  %1508 = vmatpush3.msra.mxu0 %v181_v54  ;;  %v279_v51 = vld [vmem:[%s3060_s1 + $0x730] sm:$0xff]  ;;  %v294_v53 = vld [vmem:[%s3060_s1 + $0x7a8] sm:$0xff] }
  0x5f   :  { %1543 = vmatpush3.msra.mxu1 %v213_v55  ;;  %1509 = vmatprep.subr.mxu0 %v196_v56  ;;  %v246_v54 = vld [vmem:[%s3060_s1 + $0x628] sm:$0xff]  ;;  %v261_v56 = vld [vmem:[%s3060_s1 + $0x6a0] sm:$0xff] }
  0x60   :  { %1544 = vmatprep.subr.mxu1 %v228_v57  ;;  %1510 = vmatpush3.msra.mxu0 %v180_v58  ;;  %v278_v55 = vld [vmem:[%s3060_s1 + $0x728] sm:$0xff]  ;;  %v293_v57 = vld [vmem:[%s3060_s1 + $0x7a0] sm:$0xff] }
  0x61   :  { %1545 = vmatpush3.msra.mxu1 %v212_v59  ;;  %1511 = vmatprep.subr.mxu0 %v195_v60  ;;  %v245_v58 = vld [vmem:[%s3060_s1 + $0x620] sm:$0xff]  ;;  %v260_v60 = vld [vmem:[%s3060_s1 + $0x698] sm:$0xff] }
  0x62   :  { %1546 = vmatprep.subr.mxu1 %v227_v61  ;;  %1512 = vmatpush3.msra.mxu0 %v179_v62  ;;  %v277_v59 = vld [vmem:[%s3060_s1 + $0x720] sm:$0xff]  ;;  %v292_v61 = vld [vmem:[%s3060_s1 + $0x798] sm:$0xff] }
  0x63   :  { %1547 = vmatpush3.msra.mxu1 %v211_v63  ;;  %1513 = vmatprep.subr.mxu0 %v194_v0  ;;  %v244_v62 = vld [vmem:[%s3060_s1 + $0x618] sm:$0xff]  ;;  %v259_v0 = vld [vmem:[%s3060_s1 + $0x690] sm:$0xff] }
  0x64   :  { %1548 = vmatprep.subr.mxu1 %v226_v1  ;;  %1514 = vmatpush3.msra.mxu0 %v178_v2  ;;  %v276_v63 = vld [vmem:[%s3060_s1 + $0x718] sm:$0xff]  ;;  %v291_v1 = vld [vmem:[%s3060_s1 + $0x790] sm:$0xff] }
  0x65   :  { %1549 = vmatpush3.msra.mxu1 %v210_v3  ;;  %1515 = vmatprep.subr.mxu0 %v193_v4  ;;  %v243_v2 = vld [vmem:[%s3060_s1 + $0x610] sm:$0xff]  ;;  %v258_v4 = vld [vmem:[%s3060_s1 + $0x688] sm:$0xff] }
  0x66   :  { %1550 = vmatprep.subr.mxu1 %v225_v5  ;;  %1516 = vmatpush3.msra.mxu0 %v177_v6  ;;  %v275_v3 = vld [vmem:[%s3060_s1 + $0x710] sm:$0xff]  ;;  %v290_v5 = vld [vmem:[%s3060_s1 + $0x788] sm:$0xff] }
  0x67   :  { %777 = vmatprep.mubr.f32.mxu0 %v34_v7  ;;  %1551 = vmatpush3.msra.mxu1 %v209_v8  ;;  %v242_v6 = vld [vmem:[%s3060_s1 + $0x608] sm:$0xff]  ;;  %v257_v8 = vld [vmem:[%s3060_s1 + $0x680] sm:$0xff] }
  0x68   :  { %778 = vmatmul.mubr.f32.vlgmr.msra.gmra.mxu0 %v33_v9  ;;  %847 = vmatprep.mubr.f32.mxu1 %v36_v10  ;;  %v274_v7 = vld [vmem:[%s3060_s1 + $0x708] sm:$0xff]  ;;  %v289_v9 = vld [vmem:[%s3060_s1 + $0x780] sm:$0xff] }
  0x69   :  { %1555 = vmatprep.subr.mxu0 %v272_v11  ;;  %1590 = vmatprep.subr.mxu1 %v304_v12  ;;  %v241_v10 = vld [vmem:[%s3060_s1 + $0x600] sm:$0xff]  ;;  %v38_v11 = vld [vmem:[%s3059_s0 + $0x68] sm:$0xff] }
  0x6a   :  { %848 = vmatmul.mubr.f32.vlgmr.msra.gmra.mxu1 %v35_v13  ;;  %1556 = vmatpush3.msra.mxu0 %v256_v14  ;;  %v273_v12 = vld [vmem:[%s3060_s1 + $0x700] sm:$0xff]  ;;  %v40_v14 = vld [vmem:[%s3059_s0 + $0x78] sm:$0xff] }
  0x6b   :  { %1591 = vmatpush3.msra.mxu1 %v288_v15  ;;  %1557 = vmatprep.subr.mxu0 %v271_v16  ;;  %v37_v13 = vld [vmem:[%s3059_s0 + $0x60] sm:$0xff]  ;;  %v336_v15 = vld [vmem:[%s3060_s1 + $0x8f8] sm:$0xff] }
  0x6c   :  { %1592 = vmatprep.subr.mxu1 %v303_v17  ;;  %1558 = vmatpush3.msra.mxu0 %v255_v18  ;;  %v368_v16 = vld [vmem:[%s3060_s1 + $0x9f8] sm:$0xff]  ;;  %v39_v17 = vld [vmem:[%s3059_s0 + $0x70] sm:$0xff] }
  0x6d   :  { %1593 = vmatpush3.msra.mxu1 %v287_v19  ;;  %1559 = vmatprep.subr.mxu0 %v270_v20  ;;  %v320_v18 = vld [vmem:[%s3060_s1 + $0x878] sm:$0xff]  ;;  %v335_v20 = vld [vmem:[%s3060_s1 + $0x8f0] sm:$0xff] }
  0x6e   :  { %1594 = vmatprep.subr.mxu1 %v302_v21  ;;  %1560 = vmatpush3.msra.mxu0 %v254_v22  ;;  %v352_v19 = vld [vmem:[%s3060_s1 + $0x978] sm:$0xff]  ;;  %v367_v21 = vld [vmem:[%s3060_s1 + $0x9f0] sm:$0xff] }
  0x6f   :  { %1595 = vmatpush3.msra.mxu1 %v286_v23  ;;  %1561 = vmatprep.subr.mxu0 %v269_v24 }
  0x70   :  { %1596 = vmatprep.subr.mxu1 %v301_v25  ;;  %1562 = vmatpush3.msra.mxu0 %v253_v26 }
  0x71   :  { %1597 = vmatpush3.msra.mxu1 %v285_v27  ;;  %1563 = vmatprep.subr.mxu0 %v268_v28 }
  0x72   :  { %1598 = vmatprep.subr.mxu1 %v300_v29  ;;  %1564 = vmatpush3.msra.mxu0 %v252_v30 }
  0x73   :  { %1599 = vmatpush3.msra.mxu1 %v284_v31  ;;  %1565 = vmatprep.subr.mxu0 %v267_v32 }
  0x74   :  { %1600 = vmatprep.subr.mxu1 %v299_v33  ;;  %1566 = vmatpush3.msra.mxu0 %v251_v34 }
  0x75   :  { %1601 = vmatpush3.msra.mxu1 %v283_v35  ;;  %1567 = vmatprep.subr.mxu0 %v266_v36 }
  0x76   :  { %1602 = vmatprep.subr.mxu1 %v298_v37  ;;  %1568 = vmatpush3.msra.mxu0 %v250_v38 }
  0x77   :  { %1603 = vmatpush3.msra.mxu1 %v282_v39  ;;  %1569 = vmatprep.subr.mxu0 %v265_v40 }
  0x78   :  { %1604 = vmatprep.subr.mxu1 %v297_v41  ;;  %1570 = vmatpush3.msra.mxu0 %v249_v42 }
  0x79   :  { %1605 = vmatpush3.msra.mxu1 %v281_v43  ;;  %1571 = vmatprep.subr.mxu0 %v264_v44 }
  0x7a   :  { %1606 = vmatprep.subr.mxu1 %v296_v45  ;;  %1572 = vmatpush3.msra.mxu0 %v248_v46 }
  0x7b   :  { %1607 = vmatpush3.msra.mxu1 %v280_v47  ;;  %1573 = vmatprep.subr.mxu0 %v263_v48 }
  0x7c   :  { %1608 = vmatprep.subr.mxu1 %v295_v49  ;;  %1574 = vmatpush3.msra.mxu0 %v247_v50 }
  0x7d   :  { %1609 = vmatpush3.msra.mxu1 %v279_v51  ;;  %1575 = vmatprep.subr.mxu0 %v262_v52 }
  0x7e   :  { %1610 = vmatprep.subr.mxu1 %v294_v53  ;;  %1576 = vmatpush3.msra.mxu0 %v246_v54 }
  0x7f   :  { %1611 = vmatpush3.msra.mxu1 %v278_v55  ;;  %1577 = vmatprep.subr.mxu0 %v261_v56 }
  0x80   :  { %1612 = vmatprep.subr.mxu1 %v293_v57  ;;  %1578 = vmatpush3.msra.mxu0 %v245_v58 }
  0x81   :  { %1613 = vmatpush3.msra.mxu1 %v277_v59  ;;  %1579 = vmatprep.subr.mxu0 %v260_v60 }
  0x82   :  { %1614 = vmatprep.subr.mxu1 %v292_v61  ;;  %1580 = vmatpush3.msra.mxu0 %v244_v62 }
  0x83   :  { %1615 = vmatpush3.msra.mxu1 %v276_v63  ;;  %1581 = vmatprep.subr.mxu0 %v259_v0 }
  0x84   :  { %1616 = vmatprep.subr.mxu1 %v291_v1  ;;  %1582 = vmatpush3.msra.mxu0 %v243_v2 }
  0x85   :  { %1617 = vmatpush3.msra.mxu1 %v275_v3  ;;  %1583 = vmatprep.subr.mxu0 %v258_v4 }
  0x86   :  { %1618 = vmatprep.subr.mxu1 %v290_v5  ;;  %1584 = vmatpush3.msra.mxu0 %v242_v6 }
  0x87   :  { %1619 = vmatpush3.msra.mxu1 %v274_v7  ;;  %1585 = vmatprep.subr.mxu0 %v257_v8 }
  0x88   :  { %1620 = vmatprep.subr.mxu1 %v289_v9  ;;  %1586 = vmatpush3.msra.mxu0 %v241_v10 }
  0x89   :  { %917 = vmatprep.mubr.f32.mxu0 %v38_v11  ;;  %1621 = vmatpush3.msra.mxu1 %v273_v12 }
  0x8a   :  { %918 = vmatmul.mubr.f32.vlgmr.msra.gmra.mxu0 %v37_v13  ;;  %987 = vmatprep.mubr.f32.mxu1 %v40_v14 }
  0x8b   :  { %1625 = vmatprep.subr.mxu0 %v336_v15 }
  0x8c   :  { %9 = vsyncpa [#allocation5], 0  ;;  %1660 = vmatprep.subr.mxu1 %v368_v16  ;;  %988 = vmatmul.mubr.f32.vlgmr.msra.gmra.mxu1 %v39_v17  ;;  %v319_v22 = vld [vmem:[%s3060_s1 + $0x870] sm:$0xff]  ;;  %v334_v24 = vld [vmem:[%s3060_s1 + $0x8e8] sm:$0xff]  ;;  %vm22_vm0 = vcmask 73728   ;;  %vm1274_vm1 = vcmask 80896  }
  0x8d   :  { %v351_v23 = vld [vmem:[%s3060_s1 + $0x970] sm:$0xff]  ;;  %1626 = vmatpush3.msra.mxu0 %v320_v18  ;;  %1661 = vmatpush3.msra.mxu1 %v352_v19  ;;  %v366_v25 = vld [vmem:[%s3060_s1 + $0x9e8] sm:$0xff]  ;;  %v333_v28 = vld [vmem:[%s3060_s1 + $0x8e0] sm:$0xff]  ;;  %s1792_s27 = smov [#allocation4]  }
  0x8e   :  { %1627 = vmatprep.subr.mxu0 %v335_v20  ;;  %1662 = vmatprep.subr.mxu1 %v367_v21  ;;  %v318_v26 = vld [vmem:[%s3060_s1 + $0x868] sm:$0xff]  ;;  %v365_v29 = vld [vmem:[%s3060_s1 + $0x9e0] sm:$0xff]  ;;  %v332_v32 = vld [vmem:[%s3060_s1 + $0x8d8] sm:$0xff]  ;;  %s1337_s28 = sshll.u32 %s1792_s27, 4  ;;  %s1338_s28 = int_to_ptr.vmem [resolvable:$true] %s1337_s28 }
  0x8f   :  { %v350_v27 = vld [vmem:[%s3060_s1 + $0x968] sm:$0xff]  ;;  %1628 = vmatpush3.msra.mxu0 %v319_v22  ;;  %1663 = vmatpush3.msra.mxu1 %v351_v23  ;;  %v317_v30 = vld [vmem:[%s3060_s1 + $0x860] sm:$0xff]  ;;  %v364_v33 = vld [vmem:[%s3060_s1 + $0x9d8] sm:$0xff]  ;;  %p1774_p1 = scmp.lt.s32.totalorder %s1338_s28, %s1338_s28 }
  0x90   :  { %1629 = vmatprep.subr.mxu0 %v334_v24  ;;  %1664 = vmatprep.subr.mxu1 %v366_v25  ;;  %v349_v31 = vld [vmem:[%s3060_s1 + $0x960] sm:$0xff]  ;;  %v316_v34 = vld [vmem:[%s3060_s1 + $0x858] sm:$0xff]  ;;  %v331_v36 = vld [vmem:[%s3060_s1 + $0x8d0] sm:$0xff] }
  0x91   :  { %1630 = vmatpush3.msra.mxu0 %v318_v26  ;;  %1665 = vmatpush3.msra.mxu1 %v350_v27  ;;  %v348_v35 = vld [vmem:[%s3060_s1 + $0x958] sm:$0xff]  ;;  %v363_v37 = vld [vmem:[%s3060_s1 + $0x9d0] sm:$0xff]  ;;  %v330_v40 = vld [vmem:[%s3060_s1 + $0x8c8] sm:$0xff] }
  0x92   :  { %1631 = vmatprep.subr.mxu0 %v333_v28  ;;  %1666 = vmatprep.subr.mxu1 %v365_v29  ;;  %v315_v38 = vld [vmem:[%s3060_s1 + $0x850] sm:$0xff]  ;;  %v362_v41 = vld [vmem:[%s3060_s1 + $0x9c8] sm:$0xff]  ;;  %v329_v44 = vld [vmem:[%s3060_s1 + $0x8c0] sm:$0xff] }
  0x93   :  { %1632 = vmatpush3.msra.mxu0 %v317_v30  ;;  %1667 = vmatpush3.msra.mxu1 %v349_v31  ;;  %v347_v39 = vld [vmem:[%s3060_s1 + $0x950] sm:$0xff]  ;;  %v314_v42 = vld [vmem:[%s3060_s1 + $0x848] sm:$0xff]  ;;  %v361_v45 = vld [vmem:[%s3060_s1 + $0x9c0] sm:$0xff] }
  0x94   :  { %1633 = vmatprep.subr.mxu0 %v332_v32  ;;  %1668 = vmatprep.subr.mxu1 %v364_v33  ;;  %v346_v43 = vld [vmem:[%s3060_s1 + $0x948] sm:$0xff]  ;;  %v313_v46 = vld [vmem:[%s3060_s1 + $0x840] sm:$0xff]  ;;  %v328_v48 = vld [vmem:[%s3060_s1 + $0x8b8] sm:$0xff] }
  0x95   :  { %1634 = vmatpush3.msra.mxu0 %v316_v34  ;;  %1669 = vmatpush3.msra.mxu1 %v348_v35  ;;  %v345_v47 = vld [vmem:[%s3060_s1 + $0x940] sm:$0xff]  ;;  %v360_v49 = vld [vmem:[%s3060_s1 + $0x9b8] sm:$0xff]  ;;  %v327_v52 = vld [vmem:[%s3060_s1 + $0x8b0] sm:$0xff] }
  0x96   :  { %1635 = vmatprep.subr.mxu0 %v331_v36  ;;  %1670 = vmatprep.subr.mxu1 %v363_v37  ;;  %v312_v50 = vld [vmem:[%s3060_s1 + $0x838] sm:$0xff]  ;;  %v359_v53 = vld [vmem:[%s3060_s1 + $0x9b0] sm:$0xff]  ;;  %v326_v56 = vld [vmem:[%s3060_s1 + $0x8a8] sm:$0xff] }
  0x97   :  { %1636 = vmatpush3.msra.mxu0 %v315_v38  ;;  %1671 = vmatpush3.msra.mxu1 %v347_v39  ;;  %v344_v51 = vld [vmem:[%s3060_s1 + $0x938] sm:$0xff]  ;;  %v311_v54 = vld [vmem:[%s3060_s1 + $0x830] sm:$0xff]  ;;  %v358_v57 = vld [vmem:[%s3060_s1 + $0x9a8] sm:$0xff] }
  0x98   :  { %1637 = vmatprep.subr.mxu0 %v330_v40  ;;  %1672 = vmatprep.subr.mxu1 %v362_v41  ;;  %v343_v55 = vld [vmem:[%s3060_s1 + $0x930] sm:$0xff]  ;;  %v310_v58 = vld [vmem:[%s3060_s1 + $0x828] sm:$0xff]  ;;  %v325_v60 = vld [vmem:[%s3060_s1 + $0x8a0] sm:$0xff] }
  0x99   :  { %1638 = vmatpush3.msra.mxu0 %v314_v42  ;;  %1673 = vmatpush3.msra.mxu1 %v346_v43  ;;  %v342_v59 = vld [vmem:[%s3060_s1 + $0x928] sm:$0xff]  ;;  %v357_v61 = vld [vmem:[%s3060_s1 + $0x9a0] sm:$0xff]  ;;  %v324_v0 = vld [vmem:[%s3060_s1 + $0x898] sm:$0xff] }
  0x9a   :  { %1639 = vmatprep.subr.mxu0 %v329_v44  ;;  %1674 = vmatprep.subr.mxu1 %v361_v45  ;;  %v309_v62 = vld [vmem:[%s3060_s1 + $0x820] sm:$0xff]  ;;  %v356_v1 = vld [vmem:[%s3060_s1 + $0x998] sm:$0xff]  ;;  %v323_v4 = vld [vmem:[%s3060_s1 + $0x890] sm:$0xff] }
  0x9b   :  { %1640 = vmatpush3.msra.mxu0 %v313_v46  ;;  %1675 = vmatpush3.msra.mxu1 %v345_v47  ;;  %v341_v63 = vld [vmem:[%s3060_s1 + $0x920] sm:$0xff]  ;;  %v308_v2 = vld [vmem:[%s3060_s1 + $0x818] sm:$0xff]  ;;  %v355_v5 = vld [vmem:[%s3060_s1 + $0x990] sm:$0xff] }
  0x9c   :  { %1641 = vmatprep.subr.mxu0 %v328_v48  ;;  %1676 = vmatprep.subr.mxu1 %v360_v49  ;;  %v340_v3 = vld [vmem:[%s3060_s1 + $0x918] sm:$0xff]  ;;  %v307_v6 = vld [vmem:[%s3060_s1 + $0x810] sm:$0xff]  ;;  %v322_v8 = vld [vmem:[%s3060_s1 + $0x888] sm:$0xff] }
  0x9d   :  { %1642 = vmatpush3.msra.mxu0 %v312_v50  ;;  %1677 = vmatpush3.msra.mxu1 %v344_v51  ;;  %v339_v7 = vld [vmem:[%s3060_s1 + $0x910] sm:$0xff]  ;;  %v354_v9 = vld [vmem:[%s3060_s1 + $0x988] sm:$0xff]  ;;  %v321_v12 = vld [vmem:[%s3060_s1 + $0x880] sm:$0xff] }
  0x9e   :  { %1643 = vmatprep.subr.mxu0 %v327_v52  ;;  %1678 = vmatprep.subr.mxu1 %v359_v53  ;;  %v306_v10 = vld [vmem:[%s3060_s1 + $0x808] sm:$0xff]  ;;  %v353_v13 = vld [vmem:[%s3060_s1 + $0x980] sm:$0xff]  ;;  %v44_v18 = vld [vmem:[%s3059_s0 + $0x98] sm:$0xff] }
  0x9f   :  { %1644 = vmatpush3.msra.mxu0 %v311_v54  ;;  %1679 = vmatpush3.msra.mxu1 %v343_v55  ;;  %v338_v11 = vld [vmem:[%s3060_s1 + $0x908] sm:$0xff]  ;;  %v305_v14 = vld [vmem:[%s3060_s1 + $0x800] sm:$0xff]  ;;  %v400_v19 = vld [vmem:[%s3060_s1 + $0xaf8] sm:$0xff] }
  0xa0   :  { %1645 = vmatprep.subr.mxu0 %v326_v56  ;;  %1680 = vmatprep.subr.mxu1 %v358_v57  ;;  %v42_v15 = vld [vmem:[%s3059_s0 + $0x88] sm:$0xff]  ;;  %v337_v16 = vld [vmem:[%s3060_s1 + $0x900] sm:$0xff]  ;;  %v432_v20 = vld [vmem:[%s3060_s1 + $0xbf8] sm:$0xff] }
  0xa1   :  { %1646 = vmatpush3.msra.mxu0 %v310_v58  ;;  %1681 = vmatpush3.msra.mxu1 %v342_v59  ;;  %v41_v17 = vld [vmem:[%s3059_s0 + $0x80] sm:$0xff]  ;;  %v43_v21 = vld [vmem:[%s3059_s0 + $0x90] sm:$0xff]  ;;  %v384_v22 = vld [vmem:[%s3060_s1 + $0xa78] sm:$0xff] }
  0xa2   :  { %1647 = vmatprep.subr.mxu0 %v325_v60  ;;  %1682 = vmatprep.subr.mxu1 %v357_v61  ;;  %v416_v23 = vld [vmem:[%s3060_s1 + $0xb78] sm:$0xff]  ;;  %v399_v24 = vld [vmem:[%s3060_s1 + $0xaf0] sm:$0xff]  ;;  %v398_v28 = vld [vmem:[%s3060_s1 + $0xae8] sm:$0xff] }
  0xa3   :  { %1648 = vmatpush3.msra.mxu0 %v309_v62  ;;  %1683 = vmatpush3.msra.mxu1 %v341_v63  ;;  %v431_v25 = vld [vmem:[%s3060_s1 + $0xbf0] sm:$0xff]  ;;  %v430_v29 = vld [vmem:[%s3060_s1 + $0xbe8] sm:$0xff]  ;;  %v397_v32 = vld [vmem:[%s3060_s1 + $0xae0] sm:$0xff] }
  0xa4   :  { %1649 = vmatprep.subr.mxu0 %v324_v0  ;;  %1684 = vmatprep.subr.mxu1 %v356_v1  ;;  %v383_v26 = vld [vmem:[%s3060_s1 + $0xa70] sm:$0xff]  ;;  %v382_v30 = vld [vmem:[%s3060_s1 + $0xa68] sm:$0xff]  ;;  %v429_v33 = vld [vmem:[%s3060_s1 + $0xbe0] sm:$0xff] }
  0xa5   :  { %1650 = vmatpush3.msra.mxu0 %v308_v2  ;;  %1685 = vmatpush3.msra.mxu1 %v340_v3  ;;  %v415_v27 = vld [vmem:[%s3060_s1 + $0xb70] sm:$0xff]  ;;  %v414_v31 = vld [vmem:[%s3060_s1 + $0xb68] sm:$0xff]  ;;  %v381_v34 = vld [vmem:[%s3060_s1 + $0xa60] sm:$0xff] }
  0xa6   :  { %1651 = vmatprep.subr.mxu0 %v323_v4  ;;  %1686 = vmatprep.subr.mxu1 %v355_v5  ;;  %v413_v35 = vld [vmem:[%s3060_s1 + $0xb60] sm:$0xff]  ;;  %v396_v36 = vld [vmem:[%s3060_s1 + $0xad8] sm:$0xff]  ;;  %v395_v40 = vld [vmem:[%s3060_s1 + $0xad0] sm:$0xff] }
  0xa7   :  { %1652 = vmatpush3.msra.mxu0 %v307_v6  ;;  %1687 = vmatpush3.msra.mxu1 %v339_v7  ;;  %v428_v37 = vld [vmem:[%s3060_s1 + $0xbd8] sm:$0xff]  ;;  %v427_v41 = vld [vmem:[%s3060_s1 + $0xbd0] sm:$0xff]  ;;  %v394_v44 = vld [vmem:[%s3060_s1 + $0xac8] sm:$0xff] }
  0xa8   :  { %1653 = vmatprep.subr.mxu0 %v322_v8  ;;  %1688 = vmatprep.subr.mxu1 %v354_v9  ;;  %v380_v38 = vld [vmem:[%s3060_s1 + $0xa58] sm:$0xff]  ;;  %v379_v42 = vld [vmem:[%s3060_s1 + $0xa50] sm:$0xff]  ;;  %v426_v45 = vld [vmem:[%s3060_s1 + $0xbc8] sm:$0xff] }
  0xa9   :  { %1654 = vmatpush3.msra.mxu0 %v306_v10  ;;  %1689 = vmatpush3.msra.mxu1 %v338_v11  ;;  %v412_v39 = vld [vmem:[%s3060_s1 + $0xb58] sm:$0xff]  ;;  %v411_v43 = vld [vmem:[%s3060_s1 + $0xb50] sm:$0xff]  ;;  %v378_v46 = vld [vmem:[%s3060_s1 + $0xa48] sm:$0xff] }
  0xaa   :  { %1655 = vmatprep.subr.mxu0 %v321_v12  ;;  %1690 = vmatprep.subr.mxu1 %v353_v13  ;;  %v410_v47 = vld [vmem:[%s3060_s1 + $0xb48] sm:$0xff]  ;;  %v393_v48 = vld [vmem:[%s3060_s1 + $0xac0] sm:$0xff]  ;;  %v392_v52 = vld [vmem:[%s3060_s1 + $0xab8] sm:$0xff] }
  0xab   :  { %1656 = vmatpush3.msra.mxu0 %v305_v14  ;;  %1057 = vmatprep.mubr.f32.mxu0 %v42_v15  ;;  %v425_v49 = vld [vmem:[%s3060_s1 + $0xbc0] sm:$0xff]  ;;  %v424_v53 = vld [vmem:[%s3060_s1 + $0xbb8] sm:$0xff]  ;;  %v391_v56 = vld [vmem:[%s3060_s1 + $0xab0] sm:$0xff] }
  0xac   :  { %1691 = vmatpush3.msra.mxu1 %v337_v16  ;;  %1058 = vmatmul.mubr.f32.vlgmr.msra.gmra.mxu0 %v41_v17  ;;  %v377_v50 = vld [vmem:[%s3060_s1 + $0xa40] sm:$0xff]  ;;  %v376_v54 = vld [vmem:[%s3060_s1 + $0xa38] sm:$0xff]  ;;  %v423_v57 = vld [vmem:[%s3060_s1 + $0xbb0] sm:$0xff] }
  0xad   :  { %1127 = vmatprep.mubr.f32.mxu1 %v44_v18  ;;  %1695 = vmatprep.subr.mxu0 %v400_v19  ;;  %v409_v51 = vld [vmem:[%s3060_s1 + $0xb40] sm:$0xff]  ;;  %v408_v55 = vld [vmem:[%s3060_s1 + $0xb38] sm:$0xff]  ;;  %v375_v58 = vld [vmem:[%s3060_s1 + $0xa30] sm:$0xff] }
  0xae   :  { %1730 = vmatprep.subr.mxu1 %v432_v20  ;;  %1128 = vmatmul.mubr.f32.vlgmr.msra.gmra.mxu1 %v43_v21  ;;  %v407_v59 = vld [vmem:[%s3060_s1 + $0xb30] sm:$0xff]  ;;  %v390_v60 = vld [vmem:[%s3060_s1 + $0xaa8] sm:$0xff]  ;;  %v389_v0 = vld [vmem:[%s3060_s1 + $0xaa0] sm:$0xff] }
  0xaf   :  { %1696 = vmatpush3.msra.mxu0 %v384_v22  ;;  %1731 = vmatpush3.msra.mxu1 %v416_v23  ;;  %v422_v61 = vld [vmem:[%s3060_s1 + $0xba8] sm:$0xff]  ;;  %v421_v1 = vld [vmem:[%s3060_s1 + $0xba0] sm:$0xff]  ;;  %v388_v4 = vld [vmem:[%s3060_s1 + $0xa98] sm:$0xff] }
  0xb0   :  { %1697 = vmatprep.subr.mxu0 %v399_v24  ;;  %1732 = vmatprep.subr.mxu1 %v431_v25  ;;  %v374_v62 = vld [vmem:[%s3060_s1 + $0xa28] sm:$0xff]  ;;  %v373_v2 = vld [vmem:[%s3060_s1 + $0xa20] sm:$0xff]  ;;  %v420_v5 = vld [vmem:[%s3060_s1 + $0xb98] sm:$0xff]  ;;  %v1791_v24 = vmov 0.0  }
  0xb1   :  { %1698 = vmatpush3.msra.mxu0 %v383_v26  ;;  %1733 = vmatpush3.msra.mxu1 %v415_v27  ;;  %v406_v63 = vld [vmem:[%s3060_s1 + $0xb28] sm:$0xff]  ;;  %v405_v3 = vld [vmem:[%s3060_s1 + $0xb20] sm:$0xff]  ;;  %v372_v6 = vld [vmem:[%s3060_s1 + $0xa18] sm:$0xff]  ;;  %23 = vst.msk [vmem:[#allocation2] sm:$0x1] %vm22_vm0, %v1791_v24 }
  0xb2   :  { %1699 = vmatprep.subr.mxu0 %v398_v28  ;;  %1734 = vmatprep.subr.mxu1 %v430_v29  ;;  %v404_v7 = vld [vmem:[%s3060_s1 + $0xb18] sm:$0xff]  ;;  %v387_v8 = vld [vmem:[%s3060_s1 + $0xa90] sm:$0xff]  ;;  %v386_v12 = vld [vmem:[%s3060_s1 + $0xa88] sm:$0xff]  ;;  %24 = vst.msk [vmem:[#allocation3] sm:$0x1] %vm22_vm0, %v1791_v24 }
  0xb3   :  { %1700 = vmatpush3.msra.mxu0 %v382_v30  ;;  %1735 = vmatpush3.msra.mxu1 %v414_v31  ;;  %v419_v9 = vld [vmem:[%s3060_s1 + $0xb90] sm:$0xff]  ;;  %v418_v13 = vld [vmem:[%s3060_s1 + $0xb88] sm:$0xff]  ;;  %v385_v16 = vld [vmem:[%s3060_s1 + $0xa80] sm:$0xff] }
  0xb4   :  { %1701 = vmatprep.subr.mxu0 %v397_v32  ;;  %1736 = vmatprep.subr.mxu1 %v429_v33  ;;  %v371_v10 = vld [vmem:[%s3060_s1 + $0xa10] sm:$0xff]  ;;  %v370_v14 = vld [vmem:[%s3060_s1 + $0xa08] sm:$0xff]  ;;  %v417_v17 = vld [vmem:[%s3060_s1 + $0xb80] sm:$0xff] }
  0xb5   :  { %1702 = vmatpush3.msra.mxu0 %v381_v34  ;;  %1737 = vmatpush3.msra.mxu1 %v413_v35  ;;  %v403_v11 = vld [vmem:[%s3060_s1 + $0xb10] sm:$0xff]  ;;  %v402_v15 = vld [vmem:[%s3060_s1 + $0xb08] sm:$0xff]  ;;  %v369_v18 = vld [vmem:[%s3060_s1 + $0xa00] sm:$0xff] }
  0xb6   :  { %1703 = vmatprep.subr.mxu0 %v396_v36  ;;  %1738 = vmatprep.subr.mxu1 %v428_v37  ;;  %v46_v19 = vld [vmem:[%s3059_s0 + $0xa8] sm:$0xff]  ;;  %v401_v20 = vld [vmem:[%s3060_s1 + $0xb00] sm:$0xff]  ;;  %v48_v21 = vld [vmem:[%s3059_s0 + $0xb8] sm:$0xff] }
  0xb7   :  { %1704 = vmatpush3.msra.mxu0 %v380_v38  ;;  %1739 = vmatpush3.msra.mxu1 %v412_v39  ;;  %v45_v22 = vld [vmem:[%s3059_s0 + $0xa0] sm:$0xff]  ;;  %v47_v23 = vld [vmem:[%s3059_s0 + $0xb0] sm:$0xff] }
  0xb8   :  { %1705 = vmatprep.subr.mxu0 %v395_v40  ;;  %1740 = vmatprep.subr.mxu1 %v427_v41 }
  0xb9   :  { %1706 = vmatpush3.msra.mxu0 %v379_v42  ;;  %1741 = vmatpush3.msra.mxu1 %v411_v43 }
  0xba   :  { %1707 = vmatprep.subr.mxu0 %v394_v44  ;;  %1742 = vmatprep.subr.mxu1 %v426_v45 }
  0xbb   :  { %1708 = vmatpush3.msra.mxu0 %v378_v46  ;;  %1743 = vmatpush3.msra.mxu1 %v410_v47 }
  0xbc   :  { %1709 = vmatprep.subr.mxu0 %v393_v48  ;;  %1744 = vmatprep.subr.mxu1 %v425_v49 }
  0xbd   :  { %1710 = vmatpush3.msra.mxu0 %v377_v50  ;;  %1745 = vmatpush3.msra.mxu1 %v409_v51 }
  0xbe   :  { %1711 = vmatprep.subr.mxu0 %v392_v52  ;;  %1746 = vmatprep.subr.mxu1 %v424_v53 }
  0xbf   :  { %1712 = vmatpush3.msra.mxu0 %v376_v54  ;;  %1747 = vmatpush3.msra.mxu1 %v408_v55 }
  0xc0   :  { %1713 = vmatprep.subr.mxu0 %v391_v56  ;;  %1748 = vmatprep.subr.mxu1 %v423_v57 }
  0xc1   :  { %1714 = vmatpush3.msra.mxu0 %v375_v58  ;;  %1749 = vmatpush3.msra.mxu1 %v407_v59 }
  0xc2   :  { %1715 = vmatprep.subr.mxu0 %v390_v60  ;;  %1750 = vmatprep.subr.mxu1 %v422_v61 }
  0xc3   :  { %1716 = vmatpush3.msra.mxu0 %v374_v62  ;;  %1751 = vmatpush3.msra.mxu1 %v406_v63 }
  0xc4   :  { %1717 = vmatprep.subr.mxu0 %v389_v0  ;;  %1752 = vmatprep.subr.mxu1 %v421_v1 }
  0xc5   :  { %1718 = vmatpush3.msra.mxu0 %v373_v2  ;;  %1753 = vmatpush3.msra.mxu1 %v405_v3 }
  0xc6   :  { %1719 = vmatprep.subr.mxu0 %v388_v4  ;;  %1754 = vmatprep.subr.mxu1 %v420_v5 }
  0xc7   :  { %1720 = vmatpush3.msra.mxu0 %v372_v6  ;;  %1755 = vmatpush3.msra.mxu1 %v404_v7 }
  0xc8   :  { %1721 = vmatprep.subr.mxu0 %v387_v8  ;;  %1756 = vmatprep.subr.mxu1 %v419_v9 }
  0xc9   :  { %1722 = vmatpush3.msra.mxu0 %v371_v10  ;;  %1757 = vmatpush3.msra.mxu1 %v403_v11 }
  0xca   :  { %1723 = vmatprep.subr.mxu0 %v386_v12  ;;  %1758 = vmatprep.subr.mxu1 %v418_v13 }
  0xcb   :  { %1724 = vmatpush3.msra.mxu0 %v370_v14  ;;  %1759 = vmatpush3.msra.mxu1 %v402_v15 }
  0xcc   :  { %1725 = vmatprep.subr.mxu0 %v385_v16  ;;  %1760 = vmatprep.subr.mxu1 %v417_v17 }
  0xcd   :  { %1726 = vmatpush3.msra.mxu0 %v369_v18  ;;  %1197 = vmatprep.mubr.f32.mxu0 %v46_v19 }
  0xce   :  { %1761 = vmatpush3.msra.mxu1 %v401_v20  ;;  %1267 = vmatprep.mubr.f32.mxu1 %v48_v21  ;;  %v1273_v20 = vld [vmem:[#allocation2] sm:$0x1] }
  0xcf   :  { %1198 = vmatmul.mubr.f32.vlgmr.msra.gmra.mxu0 %v45_v22  ;;  %1268 = vmatmul.mubr.f32.vlgmr.msra.gmra.mxu1 %v47_v23  ;;  %v1285_v23 = vld [vmem:[#allocation3] sm:$0x1] }
  0xe4   :  { %v1377_v25 = vpop.f32.mrf.mxu0 }
  0xe5   :  { %v1412_v26 = vpop.f32.mrf.mxu1 }
  0xe6   :  { %v1378_v27 = vpop.f32.mrf.mxu0 }
  0xe7   :  { %v1413_v29 = vpop.f32.mrf.mxu1  ;;  %v1379_v32 = vadd.f32 %v1378_v27, %v1377_v25 }
  0xe8   :  { %v1414_v33 = vadd.f32 %v1413_v29, %v1412_v26 }
  0xea   :  { %v570_v37 = vadd.f32 %v1414_v33, %v1379_v32 }
 0x106   :  { %v1447_v28 = vpop.f32.mrf.mxu0 }
 0x108   :  { %v1482_v30 = vpop.f32.mrf.mxu1  ;;  %v1448_v31 = vpop.f32.mrf.mxu0 }
 0x109   :  { %v1449_v35 = vadd.f32 %v1448_v31, %v1447_v28 }
 0x10a   :  { %v1483_v36 = vpop.f32.mrf.mxu1 }
 0x10b   :  { %v640_v40 = vadd.f32 %v1449_v35, %v570_v37  ;;  %v1484_v41 = vadd.f32 %v1483_v36, %v1482_v30  ;;  %v1310_v36 = vld [vmem:[%s3061_s2] sm:$0x1]  ;;  %s1769_s2 = scalar_lea.vmem %s1338_s28, 128 }
 0x10c   :  { %p1770_p0 = scmp.ne.s32.totalorder %s1338_s28, %s1769_s2  ;;  %p1775_p2 = scmp.lt.s32.totalorder %s1769_s2, %s1769_s2 }
 0x10d   :  { %v710_v45 = vadd.f32 %v1484_v41, %v640_v40  ;;  %v1312_v40 = vld [vmem:[%s3062_s3] sm:$0x1] }
 0x10e   :  { %p1776_p3 = por %p1775_p2, %p1774_p1 }
 0x110   :  { %p1777_p4 = pnand %p1776_p3, %p1770_p0 }
 0x128   :  { %v1517_v34 = vpop.f32.mrf.mxu0 }
 0x12a   :  { %v1552_v38 = vpop.f32.mrf.mxu1  ;;  %v1518_v39 = vpop.f32.mrf.mxu0 }
 0x12b   :  { %v1519_v43 = vadd.f32 %v1518_v39, %v1517_v34  ;;  %v1317_v34 = vlaneseq }
 0x12c   :  { %v1553_v44 = vpop.f32.mrf.mxu1 }
 0x12d   :  { %v780_v48 = vadd.f32 %v1519_v43, %v710_v45  ;;  %v1554_v49 = vadd.f32 %v1553_v44, %v1552_v38  ;;  %v1318_v35 = vshrl.u32 %v1317_v34, 7 }
 0x12f   :  { %v850_v53 = vadd.f32 %v1554_v49, %v780_v48  ;;  %v1319_v37 = vsub.s32 0, %v1318_v35 }
 0x14a   :  { %v1587_v42 = vpop.f32.mrf.mxu0 }
 0x14c   :  { %v1622_v46 = vpop.f32.mrf.mxu1  ;;  %v1588_v47 = vpop.f32.mrf.mxu0 }
 0x14d   :  { %v1589_v51 = vadd.f32 %v1588_v47, %v1587_v42 }
 0x14e   :  { %v1623_v52 = vpop.f32.mrf.mxu1 }
 0x14f   :  { %v920_v56 = vadd.f32 %v1589_v51, %v850_v53  ;;  %v1624_v57 = vadd.f32 %v1623_v52, %v1622_v46 }
 0x151   :  { %v990_v60 = vadd.f32 %v1624_v57, %v920_v56 }
 0x16c   :  { %v1657_v50 = vpop.f32.mrf.mxu0 }
 0x16e   :  { %v1692_v54 = vpop.f32.mrf.mxu1  ;;  %v1658_v55 = vpop.f32.mrf.mxu0 }
 0x16f   :  { %v1659_v58 = vadd.f32 %v1658_v55, %v1657_v50 }
 0x170   :  { %v1693_v59 = vpop.f32.mrf.mxu1 }
 0x171   :  { %v1060_v61 = vadd.f32 %v1659_v58, %v990_v60  ;;  %v1694_v62 = vadd.f32 %v1693_v59, %v1692_v54 }
 0x173   :  { %v1130_v3 = vadd.f32 %v1694_v62, %v1060_v61 }
 0x18f   :  { %v1727_v63 = vpop.f32.mrf.mxu0  ;;  %v1762_v0 = vpop.f32.mrf.mxu1 }
 0x191   :  { %v1728_v1 = vpop.f32.mrf.mxu0  ;;  %v1763_v2 = vpop.f32.mrf.mxu1 }
 0x192   :  { %v1729_v4 = vadd.f32 %v1728_v1, %v1727_v63  ;;  %v1764_v6 = vadd.f32 %v1763_v2, %v1762_v0 }
 0x194   :  { %v1200_v5 = vadd.f32 %v1729_v4, %v1130_v3 }
 0x196   :  { %v1270_v7 = vadd.f32 %v1764_v6, %v1200_v5 }
 0x198   :  { %v1286_v8 = vmul.f32 %v1270_v7, %v1270_v7  ;;  %v1275_v9 = vsel %vm1274_vm1, %v1270_v7, 0.0  ;;  %1298 = vst.msk [vmem:[#allocation4] sm:$0xff] %vm1274_vm1, %v1270_v7 }
 0x199   :  { %v1276_v10 = vrot.slane %v1275_v9, 4 }
 0x19a   :  { %v1287_v11 = vsel %vm1274_vm1, %v1286_v8, 0.0 }
 0x19b   :  { %v1277_v12 = vadd.f32 %v1276_v10, %v1275_v9  ;;  %v1288_v13 = vrot.slane %v1287_v11, 4 }
 0x19d   :  { %v1278_v14 = vrot.slane %v1277_v12, 2  ;;  %v1289_v15 = vadd.f32 %v1288_v13, %v1287_v11 }
 0x19f   :  { %v1279_v16 = vadd.f32 %v1278_v14, %v1277_v12  ;;  %v1290_v17 = vrot.slane %v1289_v15, 2  ;;  %v1315_v44 = vld [vmem:[#allocation4] sm:$0xff] }
 0x1a1   :  { %v1280_v18 = vrot.slane %v1279_v16, 1  ;;  %v1291_v19 = vadd.f32 %v1290_v17, %v1289_v15 }
 0x1a3   :  { %v1281_v21 = vadd.f32 %v1280_v18, %v1279_v16  ;;  %v1292_v22 = vrot.slane %v1291_v19, 1 }
 0x1a5   :  { %v1282_v24 = vadd.f32 %v1281_v21, %v1273_v20  ;;  %v1293_v25 = vadd.f32 %v1292_v22, %v1291_v19 }
 0x1a7   :  { %1284 = vst.msk [vmem:[#allocation2] sm:$0x1] %vm22_vm0, %v1282_v24  ;;  %v1294_v26 = vadd.f32 %v1293_v25, %v1285_v23 }
 0x1a9   :  { %1295 = vst.msk [vmem:[#allocation3] sm:$0x1] %vm22_vm0, %v1294_v26 }
 0x1ae   :  { %v1302_v27 = vld [vmem:[#allocation2] sm:$0x1] }
 0x1af   :  { %v1303_v28 = vmul.f32 0.125, %v1302_v27 }
 0x1b0   :  { %v1304_v29 = vld [vmem:[#allocation3] sm:$0x1] }
 0x1b1   :  { %v1305_v30 = vmul.f32 0.125, %v1304_v29  ;;  %v1306_v31 = vmul.f32 %v1303_v28, %v1303_v28 }
 0x1b3   :  { %v1307_v32 = vsub.f32 %v1305_v30, %v1306_v31 }
 0x1b5   :  { %v1308_v33 = vadd.f32 1e-05, %v1307_v32 }
 0x1b7   :  { %1767 = vrsqrt.f32 %v1308_v33 }
 0x1c4   :  { %v1768_v38 = vpop.eup %1767 }
 0x1c5   :  { %v1311_v39 = vmul.f32 %v1768_v38, %v1310_v36 }
 0x1c7   :  { %v1313_v41 = vmul.f32 %v1311_v39, %v1303_v28  ;;  %v1320_v42 = vrot.slane %v1311_v39, %v1319_v37 }
 0x1c9   :  { %v1314_v43 = vsub.f32 %v1312_v40, %v1313_v41  ;;  %v1322_v45 = vmul.f32 %v1320_v42, %v1315_v44 }
 0x1cb   :  { %v1327_v46 = vrot.slane %v1314_v43, %v1319_v37 }
 0x1cd   :  { %v1329_v47 = vadd.f32 %v1327_v46, %v1322_v45 }
 0x1cf   :  { %1330 = vst.msk [vmem:[#allocation4] sm:$0xff] %vm1274_vm1, %v1329_v47 }
 0x1d0   :  { %1780 = shalt.err (!%p1777_p4)
}
 0x1d1   :  { %1340 = dma.vmem_to_hbm [thread:$0]  %s1338_s28, 128, %s3063_s4, [#allocation5]  }
 0x1d2   :  { %1789 = dma.done.wait [#allocation5], 128  }
 0x1d3   :  { %1790 = vsyncadd [#allocation5], 4294967168 }
 0x1d4   :  { %1344 = vsyncpa [#allocation5], 1 }

</bundles_post_ra>
